<compile_context>
chip_gen: v5e
topology: v5e:2x2
jax: 0.10.0
libtpu: 0.0.40
codegen_flags: <defaults>
</compile_context>

<pallas_src>
import functools

import jax
import jax.numpy as jnp
from jax import lax
from jax.experimental import pallas as pl
from jax.experimental.pallas import tpu as pltpu

EPS = 1e-5          # nn.LayerNorm default
OUT_LANES = 128     # lane-dense output width (result lives in column 0)


def _layernorm(x, g, b):
    mu = jnp.mean(x, axis=-1, keepdims=True)
    xc = x - mu
    var = jnp.mean(xc * xc, axis=-1, keepdims=True)
    return xc * lax.rsqrt(var + EPS) * g + b


def ensemble_kernel(
    n_layers, tile_b, fuse_qkv,
    inp_ref,
    tokW, tokB,
    qkvW, qkvB, outW, outB,
    ln1g, ln1b, ff1W, ff1b, ff2W, ff2b, ln2g, ln2b,
    faW, faB, c1W, c1b, c2W, c2b,
    m2W1, m2b1, m2W2, m2b2,
    metaW, metaB, MMt,
    out_ref,
):
    H = outW.shape[-1]
    B = tile_b                       # rows per token in this batch tile
    cdt = tokW.dtype                 # matmul compute dtype (bf16 or f32)

    def mm(a, w):                    # MXU matmul, f32 accumulation
        return jnp.dot(a.astype(cdt), w, preferred_element_type=jnp.float32)

    inp = inp_ref[...]               # (B, Dc+Dn)
    inp_c = inp.astype(cdt)          # cast the activation slab once

    # --- model1: EnhancedTabTransformer -----------------------------------
    # token 0 = categorical projection, token 1 = numerical projection
    # (zero-padded block weights over the combined input), fused along the
    # sublane (batch) axis into one (2B, H) slab.
    x0 = mm(inp_c, tokW[0]) + tokB[0]
    x1 = mm(inp_c, tokW[1]) + tokB[1]
    x = jnp.concatenate([x0, x1], axis=0)                    # (2B, H), once/tile

    mmt = MMt[...]                   # (H, H) block-diag head mask * 1/sqrt(hd)

    for l in range(n_layers):                                # n_layers static
        if fuse_qkv:
            y = mm(x, qkvW[l]) + qkvB[l]                     # (2B, 3H)
            q, k, v = y[:, :H], y[:, H:2 * H], y[:, 2 * H:]
        else:
            q = mm(x, qkvW[l, 0]) + qkvB[l, 0]               # (2B, H)
            k = mm(x, qkvW[l, 1]) + qkvB[l, 1]
            v = mm(x, qkvW[l, 2]) + qkvB[l, 2]

        # swap the two token halves: sublane rotation by B (multiple of 8)
        # is a pure vreg permutation on the XLU, no vld/vst copies.
        k_swap = pltpu.roll(k, shift=B, axis=0)
        v_swap = pltpu.roll(v, shift=B, axis=0)

        # 2-key softmax in sigmoid form: per head,
        #   attn_self = sigmoid((q.k_self - q.k_cross) / sqrt(hd)),
        # with the score difference (broadcast across that head's lanes)
        # computed by ONE matmul against the pre-scaled head mask.
        s_diff = mm(q * (k - k_swap), mmt)                   # (2B, H)
        w = jax.nn.sigmoid(s_diff)                           # f32, EUP
        a = v_swap + w * (v - v_swap)                        # (2B, H)

        attn = mm(a, outW[l]) + outB[l]

        # post-norm encoder layer (nn.TransformerEncoderLayer default)
        x = _layernorm(x + attn, ln1g[l], ln1b[l])
        f = mm(jnp.maximum(mm(x, ff1W[l]) + ff1b[l], 0.0), ff2W[l]) + ff2b[l]
        x = _layernorm(x + f, ln2g[l], ln2b[l])

    # feature-attention gate: sigmoid(Linear(H,1)) as multiply + lane reduce;
    # the 0.5 mean-pool factor is folded into the gate.
    gate = jax.nn.sigmoid(
        jnp.sum(x * faW[...], axis=-1, keepdims=True) + faB[...]) * 0.5
    xg = x * gate
    pooled = xg[:B] + xg[B:]                                 # (B, H)

    h = jnp.maximum(mm(pooled, c1W[...]) + c1b[...], 0.0)
    out1 = jnp.sum(h * c2W[...], axis=-1, keepdims=True) + c2b[...]    # (B, 1)

    # --- model2: MLP on concat([cat, num]) (folded first-layer weight) -----
    h2 = jnp.maximum(mm(inp_c, m2W1[...]) + m2b1[...], 0.0)
    out2 = jnp.sum(h2 * m2W2[...], axis=-1, keepdims=True) + m2b2[...]  # (B, 1)

    # --- meta: Linear(2, 1) over stacked [out1, out2] -----------------------
    mw = metaW[...]                                          # (1, 2)
    final = out1 * mw[:, 0:1] + out2 * mw[:, 1:2] + metaB[...]          # (B, 1)

    # lane-dense store; column 0 is the result.
    # TODO(synk): at huge B the 128-lane f32 broadcast store is ~128x write
    # amplification; pack several tiles per row / bf16 if it shows in profiles.
    out_ref[...] = jnp.broadcast_to(final, (B, out_ref.shape[-1]))


def _pick_tile_b(B):
    """Largest divisor-of-B tile (multiple of 8, <=512) that still gives >=2
    grid steps when possible, so v7x's two TensorCores both get work."""
    if B <= 8:
        return B
    cand = [t for t in range(8, min(B, 512) + 1, 8) if B % t == 0]
    if not cand:
        return B
    multi = [t for t in cand if B // t >= 2]
    return max(multi) if multi else max(cand)


def _pick_vmem_limit_bytes():
    """~80% of the detected chip's VMEM (capped): v5e/v6e get ~100 MiB of
    their 128 MiB, v7x (64 MiB/TC) keeps headroom for Mosaic scratch."""
    cap = 64 * 1024 * 1024           # conservative fallback (v7x-sized)
    try:
        cap = int(getattr(pltpu.get_tpu_info(), "vmem_capacity_bytes", cap))
    except Exception:
        pass
    return max(32 * 1024 * 1024, min(int(cap * 0.8), 112 * 1024 * 1024))


def _prepare_weights(params, *, n_heads, compute_dtype):
    """Fold / repack the canonical parameters into the kernel layout."""
    catW, numW = params["catW"], params["numW"]
    Dc, H = catW.shape
    Dn = numW.shape[0]
    hd = H // n_heads
    f32 = jnp.float32

    # token projections as zero-padded blocks over the combined (Dc+Dn) input
    tokW = jnp.stack([
        jnp.concatenate([catW, jnp.zeros((Dn, H), f32)], axis=0),
        jnp.concatenate([jnp.zeros((Dc, H), f32), numW], axis=0)])    # (2,D,H)
    tokB = jnp.stack([params["catB"], params["numB"]])                # (2,1,H)

    # fused (H, 3H) QKV weight when it fits one lane tile, else split form
    fuse_qkv = (3 * H) <= 128
    if fuse_qkv:
        qkvW = jnp.concatenate([params["qkvW"][:, i] for i in range(3)], axis=-1)
        qkvB = jnp.concatenate([params["qkvB"][:, i] for i in range(3)], axis=-1)
    else:
        qkvW, qkvB = params["qkvW"], params["qkvB"]

    # model2 first layer folded over the combined input
    m2W1 = jnp.concatenate([params["m2Wc"], params["m2Wn"]], axis=0)  # (D, Hm)

    # 1/sqrt(head_dim) folded into the block-diagonal head mask
    mmt = params["MMt"] * (1.0 / float(hd) ** 0.5)

    ordered = (
        ("tokW", tokW, True), ("tokB", tokB, False),
        ("qkvW", qkvW, True), ("qkvB", qkvB, False),
        ("outW", params["outW"], True), ("outB", params["outB"], False),
        ("ln1g", params["ln1g"], False), ("ln1b", params["ln1b"], False),
        ("ff1W", params["ff1W"], True), ("ff1b", params["ff1b"], False),
        ("ff2W", params["ff2W"], True), ("ff2b", params["ff2b"], False),
        ("ln2g", params["ln2g"], False), ("ln2b", params["ln2b"], False),
        ("faW", params["faW"], False), ("faB", params["faB"], False),
        ("c1W", params["c1W"], True), ("c1b", params["c1b"], False),
        ("c2W", params["c2W"], False), ("c2b", params["c2b"], False),
        ("m2W1", m2W1, True), ("m2b1", params["m2b1"], False),
        ("m2W2", params["m2W2"], False), ("m2b2", params["m2b2"], False),
        ("metaW", params["metaW"], False), ("metaB", params["metaB"], False),
        ("MMt", mmt, True),
    )
    args = [w.astype(compute_dtype) if cast else w for _, w, cast in ordered]
    return args, fuse_qkv


def ensemble_forward(categorical, numerical, params, *, n_layers, n_heads,
                     tile_b=None, compute_dtype=jnp.bfloat16,
                     single_buffer_weights=False):
    B = categorical.shape[0]
    inputs = jnp.concatenate([categorical, numerical], axis=1)    # (B, Dc+Dn)
    D = inputs.shape[1]

    if tile_b is None:
        tile_b = _pick_tile_b(B)
    assert B % tile_b == 0 and (tile_b % 8 == 0 or tile_b == B), \
        "tile_b must divide B and be a multiple of 8 (pad the batch)"
    # TODO(synk): no ragged-tile handling; callers must pad B accordingly.

    weight_args, fuse_qkv = _prepare_weights(
        params, n_heads=n_heads, compute_dtype=compute_dtype)

    in_specs = [pl.BlockSpec((tile_b, D), lambda i: (i, 0))]
    # Weights: full block, constant index -> VMEM-resident across the grid.
    # pl.Buffered(1) avoids double-buffering weights that never change
    # (matters on v7x at large H/L); off by default since it is irrelevant
    # at small H and the default path is the validated one.
    wspec_kwargs = ({"pipeline_mode": pl.Buffered(1)}
                    if single_buffer_weights else {})
    for w in weight_args:
        in_specs.append(pl.BlockSpec(
            w.shape, lambda i, _nd=w.ndim: (0,) * _nd, **wspec_kwargs))

    out = pl.pallas_call(
        functools.partial(ensemble_kernel, n_layers, tile_b, fuse_qkv),
        out_shape=jax.ShapeDtypeStruct((B, OUT_LANES), jnp.float32),
        grid=(B // tile_b,),
        in_specs=in_specs,
        out_specs=pl.BlockSpec((tile_b, OUT_LANES), lambda i: (i, 0)),
        compiler_params=pltpu.CompilerParams(
            dimension_semantics=("parallel",),    # shard tiles over v7x's 2 TCs
            vmem_limit_bytes=_pick_vmem_limit_bytes()),
    )(inputs, *weight_args)

    return out[:, 0]                 # torch .squeeze() with Linear(2,1) -> (B,)


def init_params(key, Dc, Dn, H, NH, L, Hm):
    ks = iter(jax.random.split(key, 32))

    def dense(fin, fout, lead=()):
        return (jax.random.normal(next(ks), (*lead, fin, fout), jnp.float32)
                / jnp.sqrt(float(fin)))

    def row(fin):
        return (jax.random.normal(next(ks), (1, fin), jnp.float32)
                / jnp.sqrt(float(fin)))

    def bias(fout, lead=()):
        return 0.01 * jax.random.normal(next(ks), (*lead, 1, fout), jnp.float32)

    p = {
        "catW": dense(Dc, H), "catB": bias(H),
        "numW": dense(Dn, H), "numB": bias(H),
        "qkvW": dense(H, H, (L, 3)), "qkvB": bias(H, (L, 3)),
        "outW": dense(H, H, (L,)), "outB": bias(H, (L,)),
        "ln1g": jnp.ones((L, 1, H), jnp.float32),
        "ln1b": jnp.zeros((L, 1, H), jnp.float32),
        "ff1W": dense(H, 4 * H, (L,)), "ff1b": bias(4 * H, (L,)),
        "ff2W": dense(4 * H, H, (L,)), "ff2b": bias(H, (L,)),
        "ln2g": jnp.ones((L, 1, H), jnp.float32),
        "ln2b": jnp.zeros((L, 1, H), jnp.float32),
        "faW": row(H), "faB": bias(1),
        "c1W": dense(H, H), "c1b": bias(H),
        "c2W": row(H), "c2b": jnp.zeros((1, 1), jnp.float32),
        "m2Wc": dense(Dc, Hm), "m2Wn": dense(Dn, Hm), "m2b1": bias(Hm),
        "m2W2": row(Hm), "m2b2": jnp.zeros((1, 1), jnp.float32),
        "metaW": jax.random.normal(next(ks), (1, 2), jnp.float32) / jnp.sqrt(2.0),
        "metaB": 0.01 * jax.random.normal(next(ks), (1, 1), jnp.float32),
    }
    # block-diagonal head-membership mask (assumes contiguous hd-wide heads,
    # matching torch's nn.MultiheadAttention head layout).
    head_ids = jnp.arange(H) // (H // NH)
    p["MMt"] = (head_ids[:, None] == head_ids[None, :]).astype(jnp.float32)
    return p


def reference_forward(cat, num, p, *, n_layers, n_heads):
    """Pure-JAX f32 reference: standard multi-head attention + MLP + meta."""
    H = p["outW"].shape[-1]
    hd = H // n_heads
    B = cat.shape[0]

    def ln(y, g, b):
        mu = y.mean(-1, keepdims=True)
        var = ((y - mu) ** 2).mean(-1, keepdims=True)
        return (y - mu) / jnp.sqrt(var + EPS) * g + b

    x0 = cat @ p["catW"] + p["catB"]
    x1 = num @ p["numW"] + p["numB"]
    x = jnp.stack([x0, x1], axis=1)                         # (B, 2, H)

    for l in range(n_layers):
        q = x @ p["qkvW"][l, 0] + p["qkvB"][l, 0]
        k = x @ p["qkvW"][l, 1] + p["qkvB"][l, 1]
        v = x @ p["qkvW"][l, 2] + p["qkvB"][l, 2]
        qh = q.reshape(B, 2, n_heads, hd).transpose(0, 2, 1, 3)
        kh = k.reshape(B, 2, n_heads, hd).transpose(0, 2, 1, 3)
        vh = v.reshape(B, 2, n_heads, hd).transpose(0, 2, 1, 3)
        s = jnp.einsum("bhqd,bhkd->bhqk", qh, kh) / jnp.sqrt(float(hd))
        a = jax.nn.softmax(s, axis=-1)
        o = jnp.einsum("bhqk,bhkd->bhqd", a, vh).transpose(0, 2, 1, 3).reshape(B, 2, H)
        attn = o @ p["outW"][l] + p["outB"][l]
        x = ln(x + attn, p["ln1g"][l], p["ln1b"][l])
        f = (jnp.maximum(x @ p["ff1W"][l] + p["ff1b"][l], 0.0)
             @ p["ff2W"][l] + p["ff2b"][l])
        x = ln(x + f, p["ln2g"][l], p["ln2b"][l])

    gates = jax.nn.sigmoid(jnp.sum(x * p["faW"], axis=-1, keepdims=True) + p["faB"])
    pooled = (x * gates).mean(axis=1)                       # (B, H)
    h = jnp.maximum(pooled @ p["c1W"] + p["c1b"], 0.0)
    out1 = jnp.sum(h * p["c2W"], axis=-1, keepdims=True) + p["c2b"]

    inputs = jnp.concatenate([cat, num], axis=1)
    W1 = jnp.concatenate([p["m2Wc"], p["m2Wn"]], axis=0)
    h2 = jnp.maximum(inputs @ W1 + p["m2b1"], 0.0)
    out2 = jnp.sum(h2 * p["m2W2"], axis=-1, keepdims=True) + p["m2b2"]

    combined = jnp.concatenate([out1, out2], axis=1)        # (B, 2)
    out = combined @ p["metaW"].T + p["metaB"]
    return out[:, 0]


if __name__ == "__main__":
    B, Dc, Dn = 8, 16, 8
    H, NH, L, Hm = 32, 4, 3, 32

    key = jax.random.PRNGKey(0)
    k_cat, k_num, k_par = jax.random.split(key, 3)
    categorical = jax.random.normal(k_cat, (B, Dc), jnp.float32)
    numerical = jax.random.normal(k_num, (B, Dn), jnp.float32)
    params = init_params(k_par, Dc, Dn, H, NH, L, Hm)

    ref = reference_forward(categorical, numerical, params,
                            n_layers=L, n_heads=NH)

    # exactness check: f32 matmul path vs the standard-formulation reference
    out_f32 = jax.block_until_ready(
        ensemble_forward(categorical, numerical, params, n_layers=L,
                         n_heads=NH, compute_dtype=jnp.float32))
    assert out_f32.shape == (B,), out_f32.shape
    assert bool(jnp.all(jnp.isfinite(out_f32)))
    err = jnp.abs(out_f32 - ref)
    assert bool(jnp.all(err <= 2e-2 + 2e-2 * jnp.abs(ref))), \
        f"f32 mismatch vs reference: {float(jnp.max(err))}"

    # fast path: bf16 MXU operands, f32 accumulation / elementwise
    out_bf16 = jax.block_until_ready(
        ensemble_forward(categorical, numerical, params, n_layers=L,
                         n_heads=NH, compute_dtype=jnp.bfloat16))
    assert out_bf16.shape == (B,)
    assert bool(jnp.all(jnp.isfinite(out_bf16)))
    err_bf = jnp.abs(out_bf16 - ref)
    assert bool(jnp.all(err_bf <= 5e-2 + 1e-1 * jnp.abs(ref))), \
        f"bf16 mismatch vs reference: {float(jnp.max(err_bf))}"

    print("KERNEL_OK")
</pallas_src>

<mosaic_0001>
module attributes {stable_mosaic.version = 11 : i64} {
  func.func @ensemble_kernel(%arg0: i32, %arg1: memref<8x24xf32, #tpu.memory_space<vmem>>, %arg2: memref<2x24x32xf32, #tpu.memory_space<vmem>>, %arg3: memref<2x1x32xf32, #tpu.memory_space<vmem>>, %arg4: memref<3x32x96xf32, #tpu.memory_space<vmem>>, %arg5: memref<3x1x96xf32, #tpu.memory_space<vmem>>, %arg6: memref<3x32x32xf32, #tpu.memory_space<vmem>>, %arg7: memref<3x1x32xf32, #tpu.memory_space<vmem>>, %arg8: memref<3x1x32xf32, #tpu.memory_space<vmem>>, %arg9: memref<3x1x32xf32, #tpu.memory_space<vmem>>, %arg10: memref<3x32x128xf32, #tpu.memory_space<vmem>>, %arg11: memref<3x1x128xf32, #tpu.memory_space<vmem>>, %arg12: memref<3x128x32xf32, #tpu.memory_space<vmem>>, %arg13: memref<3x1x32xf32, #tpu.memory_space<vmem>>, %arg14: memref<3x1x32xf32, #tpu.memory_space<vmem>>, %arg15: memref<3x1x32xf32, #tpu.memory_space<vmem>>, %arg16: memref<1x32xf32, #tpu.memory_space<vmem>>, %arg17: memref<1x1xf32, #tpu.memory_space<vmem>>, %arg18: memref<32x32xf32, #tpu.memory_space<vmem>>, %arg19: memref<1x32xf32, #tpu.memory_space<vmem>>, %arg20: memref<1x32xf32, #tpu.memory_space<vmem>>, %arg21: memref<1x1xf32, #tpu.memory_space<vmem>>, %arg22: memref<24x32xf32, #tpu.memory_space<vmem>>, %arg23: memref<1x32xf32, #tpu.memory_space<vmem>>, %arg24: memref<1x32xf32, #tpu.memory_space<vmem>>, %arg25: memref<1x1xf32, #tpu.memory_space<vmem>>, %arg26: memref<1x2xf32, #tpu.memory_space<vmem>>, %arg27: memref<1x1xf32, #tpu.memory_space<vmem>>, %arg28: memref<32x32xf32, #tpu.memory_space<vmem>>, %arg29: memref<8x128xf32, #tpu.memory_space<vmem>>) attributes {dimension_semantics = [#tpu.dimension_semantics<parallel>], iteration_bounds = array<i64: 1>, scalar_prefetch = 0 : i64, scratch_operands = 0 : i64, tpu.core_type = #tpu.core_type<tc>, window_params = [{transform_indices = @transform_0, window_bounds = array<i64: 8, 24>}, {pipeline_mode = #tpu.pipeline_mode<synchronous>, transform_indices = @transform_1, window_bounds = array<i64: 2, 24, 32>}, {pipeline_mode = #tpu.pipeline_mode<synchronous>, transform_indices = @transform_2, window_bounds = array<i64: 2, 1, 32>}, {pipeline_mode = #tpu.pipeline_mode<synchronous>, transform_indices = @transform_3, window_bounds = array<i64: 3, 32, 96>}, {pipeline_mode = #tpu.pipeline_mode<synchronous>, transform_indices = @transform_4, window_bounds = array<i64: 3, 1, 96>}, {pipeline_mode = #tpu.pipeline_mode<synchronous>, transform_indices = @transform_5, window_bounds = array<i64: 3, 32, 32>}, {pipeline_mode = #tpu.pipeline_mode<synchronous>, transform_indices = @transform_6, window_bounds = array<i64: 3, 1, 32>}, {pipeline_mode = #tpu.pipeline_mode<synchronous>, transform_indices = @transform_7, window_bounds = array<i64: 3, 1, 32>}, {pipeline_mode = #tpu.pipeline_mode<synchronous>, transform_indices = @transform_8, window_bounds = array<i64: 3, 1, 32>}, {pipeline_mode = #tpu.pipeline_mode<synchronous>, transform_indices = @transform_9, window_bounds = array<i64: 3, 32, 128>}, {pipeline_mode = #tpu.pipeline_mode<synchronous>, transform_indices = @transform_10, window_bounds = array<i64: 3, 1, 128>}, {pipeline_mode = #tpu.pipeline_mode<synchronous>, transform_indices = @transform_11, window_bounds = array<i64: 3, 128, 32>}, {pipeline_mode = #tpu.pipeline_mode<synchronous>, transform_indices = @transform_12, window_bounds = array<i64: 3, 1, 32>}, {pipeline_mode = #tpu.pipeline_mode<synchronous>, transform_indices = @transform_13, window_bounds = array<i64: 3, 1, 32>}, {pipeline_mode = #tpu.pipeline_mode<synchronous>, transform_indices = @transform_14, window_bounds = array<i64: 3, 1, 32>}, {pipeline_mode = #tpu.pipeline_mode<synchronous>, transform_indices = @transform_15, window_bounds = array<i64: 1, 32>}, {pipeline_mode = #tpu.pipeline_mode<synchronous>, transform_indices = @transform_16, window_bounds = array<i64: 1, 1>}, {pipeline_mode = #tpu.pipeline_mode<synchronous>, transform_indices = @transform_17, window_bounds = array<i64: 32, 32>}, {pipeline_mode = #tpu.pipeline_mode<synchronous>, transform_indices = @transform_18, window_bounds = array<i64: 1, 32>}, {pipeline_mode = #tpu.pipeline_mode<synchronous>, transform_indices = @transform_19, window_bounds = array<i64: 1, 32>}, {pipeline_mode = #tpu.pipeline_mode<synchronous>, transform_indices = @transform_20, window_bounds = array<i64: 1, 1>}, {pipeline_mode = #tpu.pipeline_mode<synchronous>, transform_indices = @transform_21, window_bounds = array<i64: 24, 32>}, {pipeline_mode = #tpu.pipeline_mode<synchronous>, transform_indices = @transform_22, window_bounds = array<i64: 1, 32>}, {pipeline_mode = #tpu.pipeline_mode<synchronous>, transform_indices = @transform_23, window_bounds = array<i64: 1, 32>}, {pipeline_mode = #tpu.pipeline_mode<synchronous>, transform_indices = @transform_24, window_bounds = array<i64: 1, 1>}, {pipeline_mode = #tpu.pipeline_mode<synchronous>, transform_indices = @transform_25, window_bounds = array<i64: 1, 2>}, {pipeline_mode = #tpu.pipeline_mode<synchronous>, transform_indices = @transform_26, window_bounds = array<i64: 1, 1>}, {pipeline_mode = #tpu.pipeline_mode<synchronous>, transform_indices = @transform_27, window_bounds = array<i64: 32, 32>}, {transform_indices = @transform_28, window_bounds = array<i64: 8, 128>}]} {
    %c0 = arith.constant 0 : index
    %c0_0 = arith.constant 0 : index
    %0 = vector.load %arg1[%c0, %c0_0] : memref<8x24xf32, #tpu.memory_space<vmem>>, vector<8x24xf32>
    %c0_1 = arith.constant 0 : index
    %c0_2 = arith.constant 0 : index
    %c0_3 = arith.constant 0 : index
    %1 = vector.load %arg2[%c0_1, %c0_2, %c0_3] : memref<2x24x32xf32, #tpu.memory_space<vmem>>, vector<1x24x32xf32>
    %2 = vector.shape_cast %1 : vector<1x24x32xf32> to vector<24x32xf32>
    %cst = arith.constant dense<0.000000e+00> : vector<8x32xf32>
    %3 = tpu.matmul %0, %2, %cst {dimension_numbers = #tpu.dot_dimension_numbers<[1], [0], [0], [1], [0, 0, 1, 1], [], []>} : vector<8x24xf32>, vector<24x32xf32>, vector<8x32xf32> -> vector<8x32xf32>
    %c0_4 = arith.constant 0 : index
    %c0_5 = arith.constant 0 : index
    %c0_6 = arith.constant 0 : index
    %4 = vector.load %arg3[%c0_4, %c0_5, %c0_6] : memref<2x1x32xf32, #tpu.memory_space<vmem>>, vector<1x1x32xf32>
    %5 = vector.shape_cast %4 : vector<1x1x32xf32> to vector<1x32xf32>
    %6 = vector.broadcast %5 : vector<1x32xf32> to vector<8x32xf32>
    %7 = arith.addf %3, %6 : vector<8x32xf32>
    %c1 = arith.constant 1 : index
    %c0_7 = arith.constant 0 : index
    %c0_8 = arith.constant 0 : index
    %8 = vector.load %arg2[%c1, %c0_7, %c0_8] : memref<2x24x32xf32, #tpu.memory_space<vmem>>, vector<1x24x32xf32>
    %9 = vector.shape_cast %8 : vector<1x24x32xf32> to vector<24x32xf32>
    %cst_9 = arith.constant dense<0.000000e+00> : vector<8x32xf32>
    %10 = tpu.matmul %0, %9, %cst_9 {dimension_numbers = #tpu.dot_dimension_numbers<[1], [0], [0], [1], [0, 0, 1, 1], [], []>} : vector<8x24xf32>, vector<24x32xf32>, vector<8x32xf32> -> vector<8x32xf32>
    %c1_10 = arith.constant 1 : index
    %c0_11 = arith.constant 0 : index
    %c0_12 = arith.constant 0 : index
    %11 = vector.load %arg3[%c1_10, %c0_11, %c0_12] : memref<2x1x32xf32, #tpu.memory_space<vmem>>, vector<1x1x32xf32>
    %12 = vector.shape_cast %11 : vector<1x1x32xf32> to vector<1x32xf32>
    %13 = vector.broadcast %12 : vector<1x32xf32> to vector<8x32xf32>
    %14 = arith.addf %10, %13 : vector<8x32xf32>
    %15 = tpu.concatenate %7, %14 in 0 : vector<8x32xf32>, vector<8x32xf32> -> vector<16x32xf32>
    %c0_13 = arith.constant 0 : index
    %c0_14 = arith.constant 0 : index
    %16 = vector.load %arg28[%c0_13, %c0_14] : memref<32x32xf32, #tpu.memory_space<vmem>>, vector<32x32xf32>
    %c0_15 = arith.constant 0 : index
    %c0_16 = arith.constant 0 : index
    %c0_17 = arith.constant 0 : index
    %17 = vector.load %arg4[%c0_15, %c0_16, %c0_17] : memref<3x32x96xf32, #tpu.memory_space<vmem>>, vector<1x32x96xf32>
    %18 = vector.shape_cast %17 : vector<1x32x96xf32> to vector<32x96xf32>
    %cst_18 = arith.constant dense<0.000000e+00> : vector<16x96xf32>
    %19 = tpu.matmul %15, %18, %cst_18 {dimension_numbers = #tpu.dot_dimension_numbers<[1], [0], [0], [1], [0, 0, 1, 1], [], []>} : vector<16x32xf32>, vector<32x96xf32>, vector<16x96xf32> -> vector<16x96xf32>
    %c0_19 = arith.constant 0 : index
    %c0_20 = arith.constant 0 : index
    %c0_21 = arith.constant 0 : index
    %20 = vector.load %arg5[%c0_19, %c0_20, %c0_21] : memref<3x1x96xf32, #tpu.memory_space<vmem>>, vector<1x1x96xf32>
    %21 = vector.shape_cast %20 : vector<1x1x96xf32> to vector<1x96xf32>
    %22 = vector.broadcast %21 : vector<1x96xf32> to vector<16x96xf32>
    %23 = arith.addf %19, %22 : vector<16x96xf32>
    %24 = vector.extract_strided_slice %23 {offsets = [0, 0], sizes = [16, 32], strides = [1, 1]} : vector<16x96xf32> to vector<16x32xf32>
    %25 = vector.extract_strided_slice %23 {offsets = [0, 32], sizes = [16, 32], strides = [1, 1]} : vector<16x96xf32> to vector<16x32xf32>
    %26 = vector.extract_strided_slice %23 {offsets = [0, 64], sizes = [16, 32], strides = [1, 1]} : vector<16x96xf32> to vector<16x32xf32>
    %c8_i32 = arith.constant 8 : i32
    %27 = tpu.dynamic_rotate %25 by %c8_i32 dim 0 : vector<16x32xf32>, i32 -> vector<16x32xf32>
    %c8_i32_22 = arith.constant 8 : i32
    %28 = tpu.dynamic_rotate %26 by %c8_i32_22 dim 0 : vector<16x32xf32>, i32 -> vector<16x32xf32>
    %29 = arith.subf %25, %27 : vector<16x32xf32>
    %30 = arith.mulf %24, %29 : vector<16x32xf32>
    %cst_23 = arith.constant dense<0.000000e+00> : vector<16x32xf32>
    %31 = tpu.matmul %30, %16, %cst_23 {dimension_numbers = #tpu.dot_dimension_numbers<[1], [0], [0], [1], [0, 0, 1, 1], [], []>} : vector<16x32xf32>, vector<32x32xf32>, vector<16x32xf32> -> vector<16x32xf32>
    %32 = arith.negf %31 : vector<16x32xf32>
    %33 = math.exp %32 : vector<16x32xf32>
    %cst_24 = arith.constant 1.000000e+00 : f32
    %34 = vector.broadcast %cst_24 : f32 to vector<16x32xf32>
    %35 = arith.addf %34, %33 : vector<16x32xf32>
    %36 = arith.divf %34, %35 : vector<16x32xf32>
    %37 = arith.subf %26, %28 : vector<16x32xf32>
    %38 = arith.mulf %36, %37 : vector<16x32xf32>
    %39 = arith.addf %28, %38 : vector<16x32xf32>
    %c0_25 = arith.constant 0 : index
    %c0_26 = arith.constant 0 : index
    %c0_27 = arith.constant 0 : index
    %40 = vector.load %arg6[%c0_25, %c0_26, %c0_27] : memref<3x32x32xf32, #tpu.memory_space<vmem>>, vector<1x32x32xf32>
    %41 = vector.shape_cast %40 : vector<1x32x32xf32> to vector<32x32xf32>
    %cst_28 = arith.constant dense<0.000000e+00> : vector<16x32xf32>
    %42 = tpu.matmul %39, %41, %cst_28 {dimension_numbers = #tpu.dot_dimension_numbers<[1], [0], [0], [1], [0, 0, 1, 1], [], []>} : vector<16x32xf32>, vector<32x32xf32>, vector<16x32xf32> -> vector<16x32xf32>
    %c0_29 = arith.constant 0 : index
    %c0_30 = arith.constant 0 : index
    %c0_31 = arith.constant 0 : index
    %43 = vector.load %arg7[%c0_29, %c0_30, %c0_31] : memref<3x1x32xf32, #tpu.memory_space<vmem>>, vector<1x1x32xf32>
    %44 = vector.shape_cast %43 : vector<1x1x32xf32> to vector<1x32xf32>
    %45 = vector.broadcast %44 : vector<1x32xf32> to vector<16x32xf32>
    %46 = arith.addf %42, %45 : vector<16x32xf32>
    %47 = arith.addf %15, %46 : vector<16x32xf32>
    %c0_32 = arith.constant 0 : index
    %c0_33 = arith.constant 0 : index
    %c0_34 = arith.constant 0 : index
    %48 = vector.load %arg8[%c0_32, %c0_33, %c0_34] : memref<3x1x32xf32, #tpu.memory_space<vmem>>, vector<1x1x32xf32>
    %49 = vector.shape_cast %48 : vector<1x1x32xf32> to vector<1x32xf32>
    %c0_35 = arith.constant 0 : index
    %c0_36 = arith.constant 0 : index
    %c0_37 = arith.constant 0 : index
    %50 = vector.load %arg9[%c0_35, %c0_36, %c0_37] : memref<3x1x32xf32, #tpu.memory_space<vmem>>, vector<1x1x32xf32>
    %51 = vector.shape_cast %50 : vector<1x1x32xf32> to vector<1x32xf32>
    %cst_38 = arith.constant dense<0.000000e+00> : vector<16xf32>
    %52 = vector.multi_reduction <add>, %47, %cst_38 [1] : vector<16x32xf32> to vector<16xf32>
    %53 = vector.shape_cast %52 : vector<16xf32> to vector<16x1xf32>
    %cst_39 = arith.constant 3.200000e+01 : f32
    %54 = vector.broadcast %cst_39 : f32 to vector<16x1xf32>
    %55 = arith.divf %53, %54 : vector<16x1xf32>
    %56 = vector.broadcast %55 : vector<16x1xf32> to vector<16x32xf32>
    %57 = arith.subf %47, %56 : vector<16x32xf32>
    %58 = arith.mulf %57, %57 : vector<16x32xf32>
    %cst_40 = arith.constant dense<0.000000e+00> : vector<16xf32>
    %59 = vector.multi_reduction <add>, %58, %cst_40 [1] : vector<16x32xf32> to vector<16xf32>
    %60 = vector.shape_cast %59 : vector<16xf32> to vector<16x1xf32>
    %cst_41 = arith.constant 3.200000e+01 : f32
    %61 = vector.broadcast %cst_41 : f32 to vector<16x1xf32>
    %62 = arith.divf %60, %61 : vector<16x1xf32>
    %cst_42 = arith.constant 9.99999974E-6 : f32
    %63 = vector.broadcast %cst_42 : f32 to vector<16x1xf32>
    %64 = arith.addf %62, %63 : vector<16x1xf32>
    %65 = math.rsqrt %64 : vector<16x1xf32>
    %66 = vector.broadcast %65 : vector<16x1xf32> to vector<16x32xf32>
    %67 = arith.mulf %57, %66 : vector<16x32xf32>
    %68 = vector.broadcast %49 : vector<1x32xf32> to vector<16x32xf32>
    %69 = arith.mulf %67, %68 : vector<16x32xf32>
    %70 = vector.broadcast %51 : vector<1x32xf32> to vector<16x32xf32>
    %71 = arith.addf %69, %70 : vector<16x32xf32>
    %c0_43 = arith.constant 0 : index
    %c0_44 = arith.constant 0 : index
    %c0_45 = arith.constant 0 : index
    %72 = vector.load %arg10[%c0_43, %c0_44, %c0_45] : memref<3x32x128xf32, #tpu.memory_space<vmem>>, vector<1x32x128xf32>
    %73 = vector.shape_cast %72 : vector<1x32x128xf32> to vector<32x128xf32>
    %cst_46 = arith.constant dense<0.000000e+00> : vector<16x128xf32>
    %74 = tpu.matmul %71, %73, %cst_46 {dimension_numbers = #tpu.dot_dimension_numbers<[1], [0], [0], [1], [0, 0, 1, 1], [], []>} : vector<16x32xf32>, vector<32x128xf32>, vector<16x128xf32> -> vector<16x128xf32>
    %c0_47 = arith.constant 0 : index
    %c0_48 = arith.constant 0 : index
    %c0_49 = arith.constant 0 : index
    %75 = vector.load %arg11[%c0_47, %c0_48, %c0_49] : memref<3x1x128xf32, #tpu.memory_space<vmem>>, vector<1x1x128xf32>
    %76 = vector.shape_cast %75 : vector<1x1x128xf32> to vector<1x128xf32>
    %77 = vector.broadcast %76 : vector<1x128xf32> to vector<16x128xf32>
    %78 = arith.addf %74, %77 : vector<16x128xf32>
    %cst_50 = arith.constant 0.000000e+00 : f32
    %79 = vector.broadcast %cst_50 : f32 to vector<16x128xf32>
    %80 = arith.maximumf %78, %79 : vector<16x128xf32>
    %c0_51 = arith.constant 0 : index
    %c0_52 = arith.constant 0 : index
    %c0_53 = arith.constant 0 : index
    %81 = vector.load %arg12[%c0_51, %c0_52, %c0_53] : memref<3x128x32xf32, #tpu.memory_space<vmem>>, vector<1x128x32xf32>
    %82 = vector.shape_cast %81 : vector<1x128x32xf32> to vector<128x32xf32>
    %cst_54 = arith.constant dense<0.000000e+00> : vector<16x32xf32>
    %83 = tpu.matmul %80, %82, %cst_54 {dimension_numbers = #tpu.dot_dimension_numbers<[1], [0], [0], [1], [0, 0, 1, 1], [], []>} : vector<16x128xf32>, vector<128x32xf32>, vector<16x32xf32> -> vector<16x32xf32>
    %c0_55 = arith.constant 0 : index
    %c0_56 = arith.constant 0 : index
    %c0_57 = arith.constant 0 : index
    %84 = vector.load %arg13[%c0_55, %c0_56, %c0_57] : memref<3x1x32xf32, #tpu.memory_space<vmem>>, vector<1x1x32xf32>
    %85 = vector.shape_cast %84 : vector<1x1x32xf32> to vector<1x32xf32>
    %86 = vector.broadcast %85 : vector<1x32xf32> to vector<16x32xf32>
    %87 = arith.addf %83, %86 : vector<16x32xf32>
    %88 = arith.addf %71, %87 : vector<16x32xf32>
    %c0_58 = arith.constant 0 : index
    %c0_59 = arith.constant 0 : index
    %c0_60 = arith.constant 0 : index
    %89 = vector.load %arg14[%c0_58, %c0_59, %c0_60] : memref<3x1x32xf32, #tpu.memory_space<vmem>>, vector<1x1x32xf32>
    %90 = vector.shape_cast %89 : vector<1x1x32xf32> to vector<1x32xf32>
    %c0_61 = arith.constant 0 : index
    %c0_62 = arith.constant 0 : index
    %c0_63 = arith.constant 0 : index
    %91 = vector.load %arg15[%c0_61, %c0_62, %c0_63] : memref<3x1x32xf32, #tpu.memory_space<vmem>>, vector<1x1x32xf32>
    %92 = vector.shape_cast %91 : vector<1x1x32xf32> to vector<1x32xf32>
    %cst_64 = arith.constant dense<0.000000e+00> : vector<16xf32>
    %93 = vector.multi_reduction <add>, %88, %cst_64 [1] : vector<16x32xf32> to vector<16xf32>
    %94 = vector.shape_cast %93 : vector<16xf32> to vector<16x1xf32>
    %cst_65 = arith.constant 3.200000e+01 : f32
    %95 = vector.broadcast %cst_65 : f32 to vector<16x1xf32>
    %96 = arith.divf %94, %95 : vector<16x1xf32>
    %97 = vector.broadcast %96 : vector<16x1xf32> to vector<16x32xf32>
    %98 = arith.subf %88, %97 : vector<16x32xf32>
    %99 = arith.mulf %98, %98 : vector<16x32xf32>
    %cst_66 = arith.constant dense<0.000000e+00> : vector<16xf32>
    %100 = vector.multi_reduction <add>, %99, %cst_66 [1] : vector<16x32xf32> to vector<16xf32>
    %101 = vector.shape_cast %100 : vector<16xf32> to vector<16x1xf32>
    %cst_67 = arith.constant 3.200000e+01 : f32
    %102 = vector.broadcast %cst_67 : f32 to vector<16x1xf32>
    %103 = arith.divf %101, %102 : vector<16x1xf32>
    %cst_68 = arith.constant 9.99999974E-6 : f32
    %104 = vector.broadcast %cst_68 : f32 to vector<16x1xf32>
    %105 = arith.addf %103, %104 : vector<16x1xf32>
    %106 = math.rsqrt %105 : vector<16x1xf32>
    %107 = vector.broadcast %106 : vector<16x1xf32> to vector<16x32xf32>
    %108 = arith.mulf %98, %107 : vector<16x32xf32>
    %109 = vector.broadcast %90 : vector<1x32xf32> to vector<16x32xf32>
    %110 = arith.mulf %108, %109 : vector<16x32xf32>
    %111 = vector.broadcast %92 : vector<1x32xf32> to vector<16x32xf32>
    %112 = arith.addf %110, %111 : vector<16x32xf32>
    %c1_69 = arith.constant 1 : index
    %c0_70 = arith.constant 0 : index
    %c0_71 = arith.constant 0 : index
    %113 = vector.load %arg4[%c1_69, %c0_70, %c0_71] : memref<3x32x96xf32, #tpu.memory_space<vmem>>, vector<1x32x96xf32>
    %114 = vector.shape_cast %113 : vector<1x32x96xf32> to vector<32x96xf32>
    %cst_72 = arith.constant dense<0.000000e+00> : vector<16x96xf32>
    %115 = tpu.matmul %112, %114, %cst_72 {dimension_numbers = #tpu.dot_dimension_numbers<[1], [0], [0], [1], [0, 0, 1, 1], [], []>} : vector<16x32xf32>, vector<32x96xf32>, vector<16x96xf32> -> vector<16x96xf32>
    %c1_73 = arith.constant 1 : index
    %c0_74 = arith.constant 0 : index
    %c0_75 = arith.constant 0 : index
    %116 = vector.load %arg5[%c1_73, %c0_74, %c0_75] : memref<3x1x96xf32, #tpu.memory_space<vmem>>, vector<1x1x96xf32>
    %117 = vector.shape_cast %116 : vector<1x1x96xf32> to vector<1x96xf32>
    %118 = vector.broadcast %117 : vector<1x96xf32> to vector<16x96xf32>
    %119 = arith.addf %115, %118 : vector<16x96xf32>
    %120 = vector.extract_strided_slice %119 {offsets = [0, 0], sizes = [16, 32], strides = [1, 1]} : vector<16x96xf32> to vector<16x32xf32>
    %121 = vector.extract_strided_slice %119 {offsets = [0, 32], sizes = [16, 32], strides = [1, 1]} : vector<16x96xf32> to vector<16x32xf32>
    %122 = vector.extract_strided_slice %119 {offsets = [0, 64], sizes = [16, 32], strides = [1, 1]} : vector<16x96xf32> to vector<16x32xf32>
    %c8_i32_76 = arith.constant 8 : i32
    %123 = tpu.dynamic_rotate %121 by %c8_i32_76 dim 0 : vector<16x32xf32>, i32 -> vector<16x32xf32>
    %c8_i32_77 = arith.constant 8 : i32
    %124 = tpu.dynamic_rotate %122 by %c8_i32_77 dim 0 : vector<16x32xf32>, i32 -> vector<16x32xf32>
    %125 = arith.subf %121, %123 : vector<16x32xf32>
    %126 = arith.mulf %120, %125 : vector<16x32xf32>
    %cst_78 = arith.constant dense<0.000000e+00> : vector<16x32xf32>
    %127 = tpu.matmul %126, %16, %cst_78 {dimension_numbers = #tpu.dot_dimension_numbers<[1], [0], [0], [1], [0, 0, 1, 1], [], []>} : vector<16x32xf32>, vector<32x32xf32>, vector<16x32xf32> -> vector<16x32xf32>
    %128 = arith.negf %127 : vector<16x32xf32>
    %129 = math.exp %128 : vector<16x32xf32>
    %cst_79 = arith.constant 1.000000e+00 : f32
    %130 = vector.broadcast %cst_79 : f32 to vector<16x32xf32>
    %131 = arith.addf %130, %129 : vector<16x32xf32>
    %132 = arith.divf %130, %131 : vector<16x32xf32>
    %133 = arith.subf %122, %124 : vector<16x32xf32>
    %134 = arith.mulf %132, %133 : vector<16x32xf32>
    %135 = arith.addf %124, %134 : vector<16x32xf32>
    %c1_80 = arith.constant 1 : index
    %c0_81 = arith.constant 0 : index
    %c0_82 = arith.constant 0 : index
    %136 = vector.load %arg6[%c1_80, %c0_81, %c0_82] : memref<3x32x32xf32, #tpu.memory_space<vmem>>, vector<1x32x32xf32>
    %137 = vector.shape_cast %136 : vector<1x32x32xf32> to vector<32x32xf32>
    %cst_83 = arith.constant dense<0.000000e+00> : vector<16x32xf32>
    %138 = tpu.matmul %135, %137, %cst_83 {dimension_numbers = #tpu.dot_dimension_numbers<[1], [0], [0], [1], [0, 0, 1, 1], [], []>} : vector<16x32xf32>, vector<32x32xf32>, vector<16x32xf32> -> vector<16x32xf32>
    %c1_84 = arith.constant 1 : index
    %c0_85 = arith.constant 0 : index
    %c0_86 = arith.constant 0 : index
    %139 = vector.load %arg7[%c1_84, %c0_85, %c0_86] : memref<3x1x32xf32, #tpu.memory_space<vmem>>, vector<1x1x32xf32>
    %140 = vector.shape_cast %139 : vector<1x1x32xf32> to vector<1x32xf32>
    %141 = vector.broadcast %140 : vector<1x32xf32> to vector<16x32xf32>
    %142 = arith.addf %138, %141 : vector<16x32xf32>
    %143 = arith.addf %112, %142 : vector<16x32xf32>
    %c1_87 = arith.constant 1 : index
    %c0_88 = arith.constant 0 : index
    %c0_89 = arith.constant 0 : index
    %144 = vector.load %arg8[%c1_87, %c0_88, %c0_89] : memref<3x1x32xf32, #tpu.memory_space<vmem>>, vector<1x1x32xf32>
    %145 = vector.shape_cast %144 : vector<1x1x32xf32> to vector<1x32xf32>
    %c1_90 = arith.constant 1 : index
    %c0_91 = arith.constant 0 : index
    %c0_92 = arith.constant 0 : index
    %146 = vector.load %arg9[%c1_90, %c0_91, %c0_92] : memref<3x1x32xf32, #tpu.memory_space<vmem>>, vector<1x1x32xf32>
    %147 = vector.shape_cast %146 : vector<1x1x32xf32> to vector<1x32xf32>
    %cst_93 = arith.constant dense<0.000000e+00> : vector<16xf32>
    %148 = vector.multi_reduction <add>, %143, %cst_93 [1] : vector<16x32xf32> to vector<16xf32>
    %149 = vector.shape_cast %148 : vector<16xf32> to vector<16x1xf32>
    %cst_94 = arith.constant 3.200000e+01 : f32
    %150 = vector.broadcast %cst_94 : f32 to vector<16x1xf32>
    %151 = arith.divf %149, %150 : vector<16x1xf32>
    %152 = vector.broadcast %151 : vector<16x1xf32> to vector<16x32xf32>
    %153 = arith.subf %143, %152 : vector<16x32xf32>
    %154 = arith.mulf %153, %153 : vector<16x32xf32>
    %cst_95 = arith.constant dense<0.000000e+00> : vector<16xf32>
    %155 = vector.multi_reduction <add>, %154, %cst_95 [1] : vector<16x32xf32> to vector<16xf32>
    %156 = vector.shape_cast %155 : vector<16xf32> to vector<16x1xf32>
    %cst_96 = arith.constant 3.200000e+01 : f32
    %157 = vector.broadcast %cst_96 : f32 to vector<16x1xf32>
    %158 = arith.divf %156, %157 : vector<16x1xf32>
    %cst_97 = arith.constant 9.99999974E-6 : f32
    %159 = vector.broadcast %cst_97 : f32 to vector<16x1xf32>
    %160 = arith.addf %158, %159 : vector<16x1xf32>
    %161 = math.rsqrt %160 : vector<16x1xf32>
    %162 = vector.broadcast %161 : vector<16x1xf32> to vector<16x32xf32>
    %163 = arith.mulf %153, %162 : vector<16x32xf32>
    %164 = vector.broadcast %145 : vector<1x32xf32> to vector<16x32xf32>
    %165 = arith.mulf %163, %164 : vector<16x32xf32>
    %166 = vector.broadcast %147 : vector<1x32xf32> to vector<16x32xf32>
    %167 = arith.addf %165, %166 : vector<16x32xf32>
    %c1_98 = arith.constant 1 : index
    %c0_99 = arith.constant 0 : index
    %c0_100 = arith.constant 0 : index
    %168 = vector.load %arg10[%c1_98, %c0_99, %c0_100] : memref<3x32x128xf32, #tpu.memory_space<vmem>>, vector<1x32x128xf32>
    %169 = vector.shape_cast %168 : vector<1x32x128xf32> to vector<32x128xf32>
    %cst_101 = arith.constant dense<0.000000e+00> : vector<16x128xf32>
    %170 = tpu.matmul %167, %169, %cst_101 {dimension_numbers = #tpu.dot_dimension_numbers<[1], [0], [0], [1], [0, 0, 1, 1], [], []>} : vector<16x32xf32>, vector<32x128xf32>, vector<16x128xf32> -> vector<16x128xf32>
    %c1_102 = arith.constant 1 : index
    %c0_103 = arith.constant 0 : index
    %c0_104 = arith.constant 0 : index
    %171 = vector.load %arg11[%c1_102, %c0_103, %c0_104] : memref<3x1x128xf32, #tpu.memory_space<vmem>>, vector<1x1x128xf32>
    %172 = vector.shape_cast %171 : vector<1x1x128xf32> to vector<1x128xf32>
    %173 = vector.broadcast %172 : vector<1x128xf32> to vector<16x128xf32>
    %174 = arith.addf %170, %173 : vector<16x128xf32>
    %cst_105 = arith.constant 0.000000e+00 : f32
    %175 = vector.broadcast %cst_105 : f32 to vector<16x128xf32>
    %176 = arith.maximumf %174, %175 : vector<16x128xf32>
    %c1_106 = arith.constant 1 : index
    %c0_107 = arith.constant 0 : index
    %c0_108 = arith.constant 0 : index
    %177 = vector.load %arg12[%c1_106, %c0_107, %c0_108] : memref<3x128x32xf32, #tpu.memory_space<vmem>>, vector<1x128x32xf32>
    %178 = vector.shape_cast %177 : vector<1x128x32xf32> to vector<128x32xf32>
    %cst_109 = arith.constant dense<0.000000e+00> : vector<16x32xf32>
    %179 = tpu.matmul %176, %178, %cst_109 {dimension_numbers = #tpu.dot_dimension_numbers<[1], [0], [0], [1], [0, 0, 1, 1], [], []>} : vector<16x128xf32>, vector<128x32xf32>, vector<16x32xf32> -> vector<16x32xf32>
    %c1_110 = arith.constant 1 : index
    %c0_111 = arith.constant 0 : index
    %c0_112 = arith.constant 0 : index
    %180 = vector.load %arg13[%c1_110, %c0_111, %c0_112] : memref<3x1x32xf32, #tpu.memory_space<vmem>>, vector<1x1x32xf32>
    %181 = vector.shape_cast %180 : vector<1x1x32xf32> to vector<1x32xf32>
    %182 = vector.broadcast %181 : vector<1x32xf32> to vector<16x32xf32>
    %183 = arith.addf %179, %182 : vector<16x32xf32>
    %184 = arith.addf %167, %183 : vector<16x32xf32>
    %c1_113 = arith.constant 1 : index
    %c0_114 = arith.constant 0 : index
    %c0_115 = arith.constant 0 : index
    %185 = vector.load %arg14[%c1_113, %c0_114, %c0_115] : memref<3x1x32xf32, #tpu.memory_space<vmem>>, vector<1x1x32xf32>
    %186 = vector.shape_cast %185 : vector<1x1x32xf32> to vector<1x32xf32>
    %c1_116 = arith.constant 1 : index
    %c0_117 = arith.constant 0 : index
    %c0_118 = arith.constant 0 : index
    %187 = vector.load %arg15[%c1_116, %c0_117, %c0_118] : memref<3x1x32xf32, #tpu.memory_space<vmem>>, vector<1x1x32xf32>
    %188 = vector.shape_cast %187 : vector<1x1x32xf32> to vector<1x32xf32>
    %cst_119 = arith.constant dense<0.000000e+00> : vector<16xf32>
    %189 = vector.multi_reduction <add>, %184, %cst_119 [1] : vector<16x32xf32> to vector<16xf32>
    %190 = vector.shape_cast %189 : vector<16xf32> to vector<16x1xf32>
    %cst_120 = arith.constant 3.200000e+01 : f32
    %191 = vector.broadcast %cst_120 : f32 to vector<16x1xf32>
    %192 = arith.divf %190, %191 : vector<16x1xf32>
    %193 = vector.broadcast %192 : vector<16x1xf32> to vector<16x32xf32>
    %194 = arith.subf %184, %193 : vector<16x32xf32>
    %195 = arith.mulf %194, %194 : vector<16x32xf32>
    %cst_121 = arith.constant dense<0.000000e+00> : vector<16xf32>
    %196 = vector.multi_reduction <add>, %195, %cst_121 [1] : vector<16x32xf32> to vector<16xf32>
    %197 = vector.shape_cast %196 : vector<16xf32> to vector<16x1xf32>
    %cst_122 = arith.constant 3.200000e+01 : f32
    %198 = vector.broadcast %cst_122 : f32 to vector<16x1xf32>
    %199 = arith.divf %197, %198 : vector<16x1xf32>
    %cst_123 = arith.constant 9.99999974E-6 : f32
    %200 = vector.broadcast %cst_123 : f32 to vector<16x1xf32>
    %201 = arith.addf %199, %200 : vector<16x1xf32>
    %202 = math.rsqrt %201 : vector<16x1xf32>
    %203 = vector.broadcast %202 : vector<16x1xf32> to vector<16x32xf32>
    %204 = arith.mulf %194, %203 : vector<16x32xf32>
    %205 = vector.broadcast %186 : vector<1x32xf32> to vector<16x32xf32>
    %206 = arith.mulf %204, %205 : vector<16x32xf32>
    %207 = vector.broadcast %188 : vector<1x32xf32> to vector<16x32xf32>
    %208 = arith.addf %206, %207 : vector<16x32xf32>
    %c2 = arith.constant 2 : index
    %c0_124 = arith.constant 0 : index
    %c0_125 = arith.constant 0 : index
    %209 = vector.load %arg4[%c2, %c0_124, %c0_125] : memref<3x32x96xf32, #tpu.memory_space<vmem>>, vector<1x32x96xf32>
    %210 = vector.shape_cast %209 : vector<1x32x96xf32> to vector<32x96xf32>
    %cst_126 = arith.constant dense<0.000000e+00> : vector<16x96xf32>
    %211 = tpu.matmul %208, %210, %cst_126 {dimension_numbers = #tpu.dot_dimension_numbers<[1], [0], [0], [1], [0, 0, 1, 1], [], []>} : vector<16x32xf32>, vector<32x96xf32>, vector<16x96xf32> -> vector<16x96xf32>
    %c2_127 = arith.constant 2 : index
    %c0_128 = arith.constant 0 : index
    %c0_129 = arith.constant 0 : index
    %212 = vector.load %arg5[%c2_127, %c0_128, %c0_129] : memref<3x1x96xf32, #tpu.memory_space<vmem>>, vector<1x1x96xf32>
    %213 = vector.shape_cast %212 : vector<1x1x96xf32> to vector<1x96xf32>
    %214 = vector.broadcast %213 : vector<1x96xf32> to vector<16x96xf32>
    %215 = arith.addf %211, %214 : vector<16x96xf32>
    %216 = vector.extract_strided_slice %215 {offsets = [0, 0], sizes = [16, 32], strides = [1, 1]} : vector<16x96xf32> to vector<16x32xf32>
    %217 = vector.extract_strided_slice %215 {offsets = [0, 32], sizes = [16, 32], strides = [1, 1]} : vector<16x96xf32> to vector<16x32xf32>
    %218 = vector.extract_strided_slice %215 {offsets = [0, 64], sizes = [16, 32], strides = [1, 1]} : vector<16x96xf32> to vector<16x32xf32>
    %c8_i32_130 = arith.constant 8 : i32
    %219 = tpu.dynamic_rotate %217 by %c8_i32_130 dim 0 : vector<16x32xf32>, i32 -> vector<16x32xf32>
    %c8_i32_131 = arith.constant 8 : i32
    %220 = tpu.dynamic_rotate %218 by %c8_i32_131 dim 0 : vector<16x32xf32>, i32 -> vector<16x32xf32>
    %221 = arith.subf %217, %219 : vector<16x32xf32>
    %222 = arith.mulf %216, %221 : vector<16x32xf32>
    %cst_132 = arith.constant dense<0.000000e+00> : vector<16x32xf32>
    %223 = tpu.matmul %222, %16, %cst_132 {dimension_numbers = #tpu.dot_dimension_numbers<[1], [0], [0], [1], [0, 0, 1, 1], [], []>} : vector<16x32xf32>, vector<32x32xf32>, vector<16x32xf32> -> vector<16x32xf32>
    %224 = arith.negf %223 : vector<16x32xf32>
    %225 = math.exp %224 : vector<16x32xf32>
    %cst_133 = arith.constant 1.000000e+00 : f32
    %226 = vector.broadcast %cst_133 : f32 to vector<16x32xf32>
    %227 = arith.addf %226, %225 : vector<16x32xf32>
    %228 = arith.divf %226, %227 : vector<16x32xf32>
    %229 = arith.subf %218, %220 : vector<16x32xf32>
    %230 = arith.mulf %228, %229 : vector<16x32xf32>
    %231 = arith.addf %220, %230 : vector<16x32xf32>
    %c2_134 = arith.constant 2 : index
    %c0_135 = arith.constant 0 : index
    %c0_136 = arith.constant 0 : index
    %232 = vector.load %arg6[%c2_134, %c0_135, %c0_136] : memref<3x32x32xf32, #tpu.memory_space<vmem>>, vector<1x32x32xf32>
    %233 = vector.shape_cast %232 : vector<1x32x32xf32> to vector<32x32xf32>
    %cst_137 = arith.constant dense<0.000000e+00> : vector<16x32xf32>
    %234 = tpu.matmul %231, %233, %cst_137 {dimension_numbers = #tpu.dot_dimension_numbers<[1], [0], [0], [1], [0, 0, 1, 1], [], []>} : vector<16x32xf32>, vector<32x32xf32>, vector<16x32xf32> -> vector<16x32xf32>
    %c2_138 = arith.constant 2 : index
    %c0_139 = arith.constant 0 : index
    %c0_140 = arith.constant 0 : index
    %235 = vector.load %arg7[%c2_138, %c0_139, %c0_140] : memref<3x1x32xf32, #tpu.memory_space<vmem>>, vector<1x1x32xf32>
    %236 = vector.shape_cast %235 : vector<1x1x32xf32> to vector<1x32xf32>
    %237 = vector.broadcast %236 : vector<1x32xf32> to vector<16x32xf32>
    %238 = arith.addf %234, %237 : vector<16x32xf32>
    %239 = arith.addf %208, %238 : vector<16x32xf32>
    %c2_141 = arith.constant 2 : index
    %c0_142 = arith.constant 0 : index
    %c0_143 = arith.constant 0 : index
    %240 = vector.load %arg8[%c2_141, %c0_142, %c0_143] : memref<3x1x32xf32, #tpu.memory_space<vmem>>, vector<1x1x32xf32>
    %241 = vector.shape_cast %240 : vector<1x1x32xf32> to vector<1x32xf32>
    %c2_144 = arith.constant 2 : index
    %c0_145 = arith.constant 0 : index
    %c0_146 = arith.constant 0 : index
    %242 = vector.load %arg9[%c2_144, %c0_145, %c0_146] : memref<3x1x32xf32, #tpu.memory_space<vmem>>, vector<1x1x32xf32>
    %243 = vector.shape_cast %242 : vector<1x1x32xf32> to vector<1x32xf32>
    %cst_147 = arith.constant dense<0.000000e+00> : vector<16xf32>
    %244 = vector.multi_reduction <add>, %239, %cst_147 [1] : vector<16x32xf32> to vector<16xf32>
    %245 = vector.shape_cast %244 : vector<16xf32> to vector<16x1xf32>
    %cst_148 = arith.constant 3.200000e+01 : f32
    %246 = vector.broadcast %cst_148 : f32 to vector<16x1xf32>
    %247 = arith.divf %245, %246 : vector<16x1xf32>
    %248 = vector.broadcast %247 : vector<16x1xf32> to vector<16x32xf32>
    %249 = arith.subf %239, %248 : vector<16x32xf32>
    %250 = arith.mulf %249, %249 : vector<16x32xf32>
    %cst_149 = arith.constant dense<0.000000e+00> : vector<16xf32>
    %251 = vector.multi_reduction <add>, %250, %cst_149 [1] : vector<16x32xf32> to vector<16xf32>
    %252 = vector.shape_cast %251 : vector<16xf32> to vector<16x1xf32>
    %cst_150 = arith.constant 3.200000e+01 : f32
    %253 = vector.broadcast %cst_150 : f32 to vector<16x1xf32>
    %254 = arith.divf %252, %253 : vector<16x1xf32>
    %cst_151 = arith.constant 9.99999974E-6 : f32
    %255 = vector.broadcast %cst_151 : f32 to vector<16x1xf32>
    %256 = arith.addf %254, %255 : vector<16x1xf32>
    %257 = math.rsqrt %256 : vector<16x1xf32>
    %258 = vector.broadcast %257 : vector<16x1xf32> to vector<16x32xf32>
    %259 = arith.mulf %249, %258 : vector<16x32xf32>
    %260 = vector.broadcast %241 : vector<1x32xf32> to vector<16x32xf32>
    %261 = arith.mulf %259, %260 : vector<16x32xf32>
    %262 = vector.broadcast %243 : vector<1x32xf32> to vector<16x32xf32>
    %263 = arith.addf %261, %262 : vector<16x32xf32>
    %c2_152 = arith.constant 2 : index
    %c0_153 = arith.constant 0 : index
    %c0_154 = arith.constant 0 : index
    %264 = vector.load %arg10[%c2_152, %c0_153, %c0_154] : memref<3x32x128xf32, #tpu.memory_space<vmem>>, vector<1x32x128xf32>
    %265 = vector.shape_cast %264 : vector<1x32x128xf32> to vector<32x128xf32>
    %cst_155 = arith.constant dense<0.000000e+00> : vector<16x128xf32>
    %266 = tpu.matmul %263, %265, %cst_155 {dimension_numbers = #tpu.dot_dimension_numbers<[1], [0], [0], [1], [0, 0, 1, 1], [], []>} : vector<16x32xf32>, vector<32x128xf32>, vector<16x128xf32> -> vector<16x128xf32>
    %c2_156 = arith.constant 2 : index
    %c0_157 = arith.constant 0 : index
    %c0_158 = arith.constant 0 : index
    %267 = vector.load %arg11[%c2_156, %c0_157, %c0_158] : memref<3x1x128xf32, #tpu.memory_space<vmem>>, vector<1x1x128xf32>
    %268 = vector.shape_cast %267 : vector<1x1x128xf32> to vector<1x128xf32>
    %269 = vector.broadcast %268 : vector<1x128xf32> to vector<16x128xf32>
    %270 = arith.addf %266, %269 : vector<16x128xf32>
    %cst_159 = arith.constant 0.000000e+00 : f32
    %271 = vector.broadcast %cst_159 : f32 to vector<16x128xf32>
    %272 = arith.maximumf %270, %271 : vector<16x128xf32>
    %c2_160 = arith.constant 2 : index
    %c0_161 = arith.constant 0 : index
    %c0_162 = arith.constant 0 : index
    %273 = vector.load %arg12[%c2_160, %c0_161, %c0_162] : memref<3x128x32xf32, #tpu.memory_space<vmem>>, vector<1x128x32xf32>
    %274 = vector.shape_cast %273 : vector<1x128x32xf32> to vector<128x32xf32>
    %cst_163 = arith.constant dense<0.000000e+00> : vector<16x32xf32>
    %275 = tpu.matmul %272, %274, %cst_163 {dimension_numbers = #tpu.dot_dimension_numbers<[1], [0], [0], [1], [0, 0, 1, 1], [], []>} : vector<16x128xf32>, vector<128x32xf32>, vector<16x32xf32> -> vector<16x32xf32>
    %c2_164 = arith.constant 2 : index
    %c0_165 = arith.constant 0 : index
    %c0_166 = arith.constant 0 : index
    %276 = vector.load %arg13[%c2_164, %c0_165, %c0_166] : memref<3x1x32xf32, #tpu.memory_space<vmem>>, vector<1x1x32xf32>
    %277 = vector.shape_cast %276 : vector<1x1x32xf32> to vector<1x32xf32>
    %278 = vector.broadcast %277 : vector<1x32xf32> to vector<16x32xf32>
    %279 = arith.addf %275, %278 : vector<16x32xf32>
    %280 = arith.addf %263, %279 : vector<16x32xf32>
    %c2_167 = arith.constant 2 : index
    %c0_168 = arith.constant 0 : index
    %c0_169 = arith.constant 0 : index
    %281 = vector.load %arg14[%c2_167, %c0_168, %c0_169] : memref<3x1x32xf32, #tpu.memory_space<vmem>>, vector<1x1x32xf32>
    %282 = vector.shape_cast %281 : vector<1x1x32xf32> to vector<1x32xf32>
    %c2_170 = arith.constant 2 : index
    %c0_171 = arith.constant 0 : index
    %c0_172 = arith.constant 0 : index
    %283 = vector.load %arg15[%c2_170, %c0_171, %c0_172] : memref<3x1x32xf32, #tpu.memory_space<vmem>>, vector<1x1x32xf32>
    %284 = vector.shape_cast %283 : vector<1x1x32xf32> to vector<1x32xf32>
    %cst_173 = arith.constant dense<0.000000e+00> : vector<16xf32>
    %285 = vector.multi_reduction <add>, %280, %cst_173 [1] : vector<16x32xf32> to vector<16xf32>
    %286 = vector.shape_cast %285 : vector<16xf32> to vector<16x1xf32>
    %cst_174 = arith.constant 3.200000e+01 : f32
    %287 = vector.broadcast %cst_174 : f32 to vector<16x1xf32>
    %288 = arith.divf %286, %287 : vector<16x1xf32>
    %289 = vector.broadcast %288 : vector<16x1xf32> to vector<16x32xf32>
    %290 = arith.subf %280, %289 : vector<16x32xf32>
    %291 = arith.mulf %290, %290 : vector<16x32xf32>
    %cst_175 = arith.constant dense<0.000000e+00> : vector<16xf32>
    %292 = vector.multi_reduction <add>, %291, %cst_175 [1] : vector<16x32xf32> to vector<16xf32>
    %293 = vector.shape_cast %292 : vector<16xf32> to vector<16x1xf32>
    %cst_176 = arith.constant 3.200000e+01 : f32
    %294 = vector.broadcast %cst_176 : f32 to vector<16x1xf32>
    %295 = arith.divf %293, %294 : vector<16x1xf32>
    %cst_177 = arith.constant 9.99999974E-6 : f32
    %296 = vector.broadcast %cst_177 : f32 to vector<16x1xf32>
    %297 = arith.addf %295, %296 : vector<16x1xf32>
    %298 = math.rsqrt %297 : vector<16x1xf32>
    %299 = vector.broadcast %298 : vector<16x1xf32> to vector<16x32xf32>
    %300 = arith.mulf %290, %299 : vector<16x32xf32>
    %301 = vector.broadcast %282 : vector<1x32xf32> to vector<16x32xf32>
    %302 = arith.mulf %300, %301 : vector<16x32xf32>
    %303 = vector.broadcast %284 : vector<1x32xf32> to vector<16x32xf32>
    %304 = arith.addf %302, %303 : vector<16x32xf32>
    %c0_178 = arith.constant 0 : index
    %c0_179 = arith.constant 0 : index
    %305 = vector.load %arg16[%c0_178, %c0_179] : memref<1x32xf32, #tpu.memory_space<vmem>>, vector<1x32xf32>
    %306 = vector.broadcast %305 : vector<1x32xf32> to vector<16x32xf32>
    %307 = arith.mulf %304, %306 : vector<16x32xf32>
    %cst_180 = arith.constant dense<0.000000e+00> : vector<16xf32>
    %308 = vector.multi_reduction <add>, %307, %cst_180 [1] : vector<16x32xf32> to vector<16xf32>
    %309 = vector.shape_cast %308 : vector<16xf32> to vector<16x1xf32>
    %c0_181 = arith.constant 0 : index
    %c0_182 = arith.constant 0 : index
    %310 = vector.load %arg17[%c0_181, %c0_182] : memref<1x1xf32, #tpu.memory_space<vmem>>, vector<1x1xf32>
    %311 = vector.broadcast %310 : vector<1x1xf32> to vector<16x1xf32>
    %312 = arith.addf %309, %311 : vector<16x1xf32>
    %313 = arith.negf %312 : vector<16x1xf32>
    %314 = math.exp %313 : vector<16x1xf32>
    %cst_183 = arith.constant 1.000000e+00 : f32
    %315 = vector.broadcast %cst_183 : f32 to vector<16x1xf32>
    %316 = arith.addf %315, %314 : vector<16x1xf32>
    %317 = arith.divf %315, %316 : vector<16x1xf32>
    %cst_184 = arith.constant 5.000000e-01 : f32
    %318 = vector.broadcast %cst_184 : f32 to vector<16x1xf32>
    %319 = arith.mulf %317, %318 : vector<16x1xf32>
    %320 = vector.broadcast %319 : vector<16x1xf32> to vector<16x32xf32>
    %321 = arith.mulf %304, %320 : vector<16x32xf32>
    %322 = vector.extract_strided_slice %321 {offsets = [0, 0], sizes = [8, 32], strides = [1, 1]} : vector<16x32xf32> to vector<8x32xf32>
    %323 = vector.extract_strided_slice %321 {offsets = [8, 0], sizes = [8, 32], strides = [1, 1]} : vector<16x32xf32> to vector<8x32xf32>
    %324 = arith.addf %322, %323 : vector<8x32xf32>
    %c0_185 = arith.constant 0 : index
    %c0_186 = arith.constant 0 : index
    %325 = vector.load %arg18[%c0_185, %c0_186] : memref<32x32xf32, #tpu.memory_space<vmem>>, vector<32x32xf32>
    %cst_187 = arith.constant dense<0.000000e+00> : vector<8x32xf32>
    %326 = tpu.matmul %324, %325, %cst_187 {dimension_numbers = #tpu.dot_dimension_numbers<[1], [0], [0], [1], [0, 0, 1, 1], [], []>} : vector<8x32xf32>, vector<32x32xf32>, vector<8x32xf32> -> vector<8x32xf32>
    %c0_188 = arith.constant 0 : index
    %c0_189 = arith.constant 0 : index
    %327 = vector.load %arg19[%c0_188, %c0_189] : memref<1x32xf32, #tpu.memory_space<vmem>>, vector<1x32xf32>
    %328 = vector.broadcast %327 : vector<1x32xf32> to vector<8x32xf32>
    %329 = arith.addf %326, %328 : vector<8x32xf32>
    %cst_190 = arith.constant 0.000000e+00 : f32
    %330 = vector.broadcast %cst_190 : f32 to vector<8x32xf32>
    %331 = arith.maximumf %329, %330 : vector<8x32xf32>
    %c0_191 = arith.constant 0 : index
    %c0_192 = arith.constant 0 : index
    %332 = vector.load %arg20[%c0_191, %c0_192] : memref<1x32xf32, #tpu.memory_space<vmem>>, vector<1x32xf32>
    %333 = vector.broadcast %332 : vector<1x32xf32> to vector<8x32xf32>
    %334 = arith.mulf %331, %333 : vector<8x32xf32>
    %cst_193 = arith.constant dense<0.000000e+00> : vector<8xf32>
    %335 = vector.multi_reduction <add>, %334, %cst_193 [1] : vector<8x32xf32> to vector<8xf32>
    %336 = vector.shape_cast %335 : vector<8xf32> to vector<8x1xf32>
    %c0_194 = arith.constant 0 : index
    %c0_195 = arith.constant 0 : index
    %337 = vector.load %arg21[%c0_194, %c0_195] : memref<1x1xf32, #tpu.memory_space<vmem>>, vector<1x1xf32>
    %338 = vector.broadcast %337 : vector<1x1xf32> to vector<8x1xf32>
    %339 = arith.addf %336, %338 : vector<8x1xf32>
    %c0_196 = arith.constant 0 : index
    %c0_197 = arith.constant 0 : index
    %340 = vector.load %arg22[%c0_196, %c0_197] : memref<24x32xf32, #tpu.memory_space<vmem>>, vector<24x32xf32>
    %cst_198 = arith.constant dense<0.000000e+00> : vector<8x32xf32>
    %341 = tpu.matmul %0, %340, %cst_198 {dimension_numbers = #tpu.dot_dimension_numbers<[1], [0], [0], [1], [0, 0, 1, 1], [], []>} : vector<8x24xf32>, vector<24x32xf32>, vector<8x32xf32> -> vector<8x32xf32>
    %c0_199 = arith.constant 0 : index
    %c0_200 = arith.constant 0 : index
    %342 = vector.load %arg23[%c0_199, %c0_200] : memref<1x32xf32, #tpu.memory_space<vmem>>, vector<1x32xf32>
    %343 = vector.broadcast %342 : vector<1x32xf32> to vector<8x32xf32>
    %344 = arith.addf %341, %343 : vector<8x32xf32>
    %cst_201 = arith.constant 0.000000e+00 : f32
    %345 = vector.broadcast %cst_201 : f32 to vector<8x32xf32>
    %346 = arith.maximumf %344, %345 : vector<8x32xf32>
    %c0_202 = arith.constant 0 : index
    %c0_203 = arith.constant 0 : index
    %347 = vector.load %arg24[%c0_202, %c0_203] : memref<1x32xf32, #tpu.memory_space<vmem>>, vector<1x32xf32>
    %348 = vector.broadcast %347 : vector<1x32xf32> to vector<8x32xf32>
    %349 = arith.mulf %346, %348 : vector<8x32xf32>
    %cst_204 = arith.constant dense<0.000000e+00> : vector<8xf32>
    %350 = vector.multi_reduction <add>, %349, %cst_204 [1] : vector<8x32xf32> to vector<8xf32>
    %351 = vector.shape_cast %350 : vector<8xf32> to vector<8x1xf32>
    %c0_205 = arith.constant 0 : index
    %c0_206 = arith.constant 0 : index
    %352 = vector.load %arg25[%c0_205, %c0_206] : memref<1x1xf32, #tpu.memory_space<vmem>>, vector<1x1xf32>
    %353 = vector.broadcast %352 : vector<1x1xf32> to vector<8x1xf32>
    %354 = arith.addf %351, %353 : vector<8x1xf32>
    %c0_207 = arith.constant 0 : index
    %c0_208 = arith.constant 0 : index
    %355 = vector.load %arg26[%c0_207, %c0_208] : memref<1x2xf32, #tpu.memory_space<vmem>>, vector<1x2xf32>
    %356 = vector.extract_strided_slice %355 {offsets = [0, 0], sizes = [1, 1], strides = [1, 1]} : vector<1x2xf32> to vector<1x1xf32>
    %357 = vector.broadcast %356 : vector<1x1xf32> to vector<8x1xf32>
    %358 = arith.mulf %339, %357 : vector<8x1xf32>
    %359 = vector.extract_strided_slice %355 {offsets = [0, 1], sizes = [1, 1], strides = [1, 1]} : vector<1x2xf32> to vector<1x1xf32>
    %360 = vector.broadcast %359 : vector<1x1xf32> to vector<8x1xf32>
    %361 = arith.mulf %354, %360 : vector<8x1xf32>
    %362 = arith.addf %358, %361 : vector<8x1xf32>
    %c0_209 = arith.constant 0 : index
    %c0_210 = arith.constant 0 : index
    %363 = vector.load %arg27[%c0_209, %c0_210] : memref<1x1xf32, #tpu.memory_space<vmem>>, vector<1x1xf32>
    %364 = vector.broadcast %363 : vector<1x1xf32> to vector<8x1xf32>
    %365 = arith.addf %362, %364 : vector<8x1xf32>
    %366 = vector.shape_cast %365 : vector<8x1xf32> to vector<8x1xf32>
    %367 = vector.broadcast %366 : vector<8x1xf32> to vector<8x128xf32>
    %c0_211 = arith.constant 0 : index
    %c0_212 = arith.constant 0 : index
    %368 = vector.load %arg29[%c0_211, %c0_212] : memref<8x128xf32, #tpu.memory_space<vmem>>, vector<8x128xf32>
    tpu.vector_store %arg29[%c0_211, %c0_212], %367 {strides = array<i32>} : memref<8x128xf32, #tpu.memory_space<vmem>>, vector<8x128xf32>,
    return
  }
  func.func @transform_0(%arg0: i32) -> (i32, i32) {
    %c0_i32 = arith.constant 0 : i32
    %c0_i32_0 = arith.constant 0 : i32
    return %arg0, %c0_i32 : i32, i32
  }
  func.func @transform_1(%arg0: i32) -> (i32, i32, i32) {
    %c0_i32 = arith.constant 0 : i32
    %c0_i32_0 = arith.constant 0 : i32
    %c0_i32_1 = arith.constant 0 : i32
    %c0_i32_2 = arith.constant 0 : i32
    return %c0_i32, %c0_i32_0, %c0_i32_1 : i32, i32, i32
  }
  func.func @transform_2(%arg0: i32) -> (i32, i32, i32) {
    %c0_i32 = arith.constant 0 : i32
    %c0_i32_0 = arith.constant 0 : i32
    %c0_i32_1 = arith.constant 0 : i32
    %c0_i32_2 = arith.constant 0 : i32
    return %c0_i32, %c0_i32_0, %c0_i32_1 : i32, i32, i32
  }
  func.func @transform_3(%arg0: i32) -> (i32, i32, i32) {
    %c0_i32 = arith.constant 0 : i32
    %c0_i32_0 = arith.constant 0 : i32
    %c0_i32_1 = arith.constant 0 : i32
    %c0_i32_2 = arith.constant 0 : i32
    return %c0_i32, %c0_i32_0, %c0_i32_1 : i32, i32, i32
  }
  func.func @transform_4(%arg0: i32) -> (i32, i32, i32) {
    %c0_i32 = arith.constant 0 : i32
    %c0_i32_0 = arith.constant 0 : i32
    %c0_i32_1 = arith.constant 0 : i32
    %c0_i32_2 = arith.constant 0 : i32
    return %c0_i32, %c0_i32_0, %c0_i32_1 : i32, i32, i32
  }
  func.func @transform_5(%arg0: i32) -> (i32, i32, i32) {
    %c0_i32 = arith.constant 0 : i32
    %c0_i32_0 = arith.constant 0 : i32
    %c0_i32_1 = arith.constant 0 : i32
    %c0_i32_2 = arith.constant 0 : i32
    return %c0_i32, %c0_i32_0, %c0_i32_1 : i32, i32, i32
  }
  func.func @transform_6(%arg0: i32) -> (i32, i32, i32) {
    %c0_i32 = arith.constant 0 : i32
    %c0_i32_0 = arith.constant 0 : i32
    %c0_i32_1 = arith.constant 0 : i32
    %c0_i32_2 = arith.constant 0 : i32
    return %c0_i32, %c0_i32_0, %c0_i32_1 : i32, i32, i32
  }
  func.func @transform_7(%arg0: i32) -> (i32, i32, i32) {
    %c0_i32 = arith.constant 0 : i32
    %c0_i32_0 = arith.constant 0 : i32
    %c0_i32_1 = arith.constant 0 : i32
    %c0_i32_2 = arith.constant 0 : i32
    return %c0_i32, %c0_i32_0, %c0_i32_1 : i32, i32, i32
  }
  func.func @transform_8(%arg0: i32) -> (i32, i32, i32) {
    %c0_i32 = arith.constant 0 : i32
    %c0_i32_0 = arith.constant 0 : i32
    %c0_i32_1 = arith.constant 0 : i32
    %c0_i32_2 = arith.constant 0 : i32
    return %c0_i32, %c0_i32_0, %c0_i32_1 : i32, i32, i32
  }
  func.func @transform_9(%arg0: i32) -> (i32, i32, i32) {
    %c0_i32 = arith.constant 0 : i32
    %c0_i32_0 = arith.constant 0 : i32
    %c0_i32_1 = arith.constant 0 : i32
    %c0_i32_2 = arith.constant 0 : i32
    return %c0_i32, %c0_i32_0, %c0_i32_1 : i32, i32, i32
  }
  func.func @transform_10(%arg0: i32) -> (i32, i32, i32) {
    %c0_i32 = arith.constant 0 : i32
    %c0_i32_0 = arith.constant 0 : i32
    %c0_i32_1 = arith.constant 0 : i32
    %c0_i32_2 = arith.constant 0 : i32
    return %c0_i32, %c0_i32_0, %c0_i32_1 : i32, i32, i32
  }
  func.func @transform_11(%arg0: i32) -> (i32, i32, i32) {
    %c0_i32 = arith.constant 0 : i32
    %c0_i32_0 = arith.constant 0 : i32
    %c0_i32_1 = arith.constant 0 : i32
    %c0_i32_2 = arith.constant 0 : i32
    return %c0_i32, %c0_i32_0, %c0_i32_1 : i32, i32, i32
  }
  func.func @transform_12(%arg0: i32) -> (i32, i32, i32) {
    %c0_i32 = arith.constant 0 : i32
    %c0_i32_0 = arith.constant 0 : i32
    %c0_i32_1 = arith.constant 0 : i32
    %c0_i32_2 = arith.constant 0 : i32
    return %c0_i32, %c0_i32_0, %c0_i32_1 : i32, i32, i32
  }
  func.func @transform_13(%arg0: i32) -> (i32, i32, i32) {
    %c0_i32 = arith.constant 0 : i32
    %c0_i32_0 = arith.constant 0 : i32
    %c0_i32_1 = arith.constant 0 : i32
    %c0_i32_2 = arith.constant 0 : i32
    return %c0_i32, %c0_i32_0, %c0_i32_1 : i32, i32, i32
  }
  func.func @transform_14(%arg0: i32) -> (i32, i32, i32) {
    %c0_i32 = arith.constant 0 : i32
    %c0_i32_0 = arith.constant 0 : i32
    %c0_i32_1 = arith.constant 0 : i32
    %c0_i32_2 = arith.constant 0 : i32
    return %c0_i32, %c0_i32_0, %c0_i32_1 : i32, i32, i32
  }
  func.func @transform_15(%arg0: i32) -> (i32, i32) {
    %c0_i32 = arith.constant 0 : i32
    %c0_i32_0 = arith.constant 0 : i32
    %c0_i32_1 = arith.constant 0 : i32
    return %c0_i32, %c0_i32_0 : i32, i32
  }
  func.func @transform_16(%arg0: i32) -> (i32, i32) {
    %c0_i32 = arith.constant 0 : i32
    %c0_i32_0 = arith.constant 0 : i32
    %c0_i32_1 = arith.constant 0 : i32
    return %c0_i32, %c0_i32_0 : i32, i32
  }
  func.func @transform_17(%arg0: i32) -> (i32, i32) {
    %c0_i32 = arith.constant 0 : i32
    %c0_i32_0 = arith.constant 0 : i32
    %c0_i32_1 = arith.constant 0 : i32
    return %c0_i32, %c0_i32_0 : i32, i32
  }
  func.func @transform_18(%arg0: i32) -> (i32, i32) {
    %c0_i32 = arith.constant 0 : i32
    %c0_i32_0 = arith.constant 0 : i32
    %c0_i32_1 = arith.constant 0 : i32
    return %c0_i32, %c0_i32_0 : i32, i32
  }
  func.func @transform_19(%arg0: i32) -> (i32, i32) {
    %c0_i32 = arith.constant 0 : i32
    %c0_i32_0 = arith.constant 0 : i32
    %c0_i32_1 = arith.constant 0 : i32
    return %c0_i32, %c0_i32_0 : i32, i32
  }
  func.func @transform_20(%arg0: i32) -> (i32, i32) {
    %c0_i32 = arith.constant 0 : i32
    %c0_i32_0 = arith.constant 0 : i32
    %c0_i32_1 = arith.constant 0 : i32
    return %c0_i32, %c0_i32_0 : i32, i32
  }
  func.func @transform_21(%arg0: i32) -> (i32, i32) {
    %c0_i32 = arith.constant 0 : i32
    %c0_i32_0 = arith.constant 0 : i32
    %c0_i32_1 = arith.constant 0 : i32
    return %c0_i32, %c0_i32_0 : i32, i32
  }
  func.func @transform_22(%arg0: i32) -> (i32, i32) {
    %c0_i32 = arith.constant 0 : i32
    %c0_i32_0 = arith.constant 0 : i32
    %c0_i32_1 = arith.constant 0 : i32
    return %c0_i32, %c0_i32_0 : i32, i32
  }
  func.func @transform_23(%arg0: i32) -> (i32, i32) {
    %c0_i32 = arith.constant 0 : i32
    %c0_i32_0 = arith.constant 0 : i32
    %c0_i32_1 = arith.constant 0 : i32
    return %c0_i32, %c0_i32_0 : i32, i32
  }
  func.func @transform_24(%arg0: i32) -> (i32, i32) {
    %c0_i32 = arith.constant 0 : i32
    %c0_i32_0 = arith.constant 0 : i32
    %c0_i32_1 = arith.constant 0 : i32
    return %c0_i32, %c0_i32_0 : i32, i32
  }
  func.func @transform_25(%arg0: i32) -> (i32, i32) {
    %c0_i32 = arith.constant 0 : i32
    %c0_i32_0 = arith.constant 0 : i32
    %c0_i32_1 = arith.constant 0 : i32
    return %c0_i32, %c0_i32_0 : i32, i32
  }
  func.func @transform_26(%arg0: i32) -> (i32, i32) {
    %c0_i32 = arith.constant 0 : i32
    %c0_i32_0 = arith.constant 0 : i32
    %c0_i32_1 = arith.constant 0 : i32
    return %c0_i32, %c0_i32_0 : i32, i32
  }
  func.func @transform_27(%arg0: i32) -> (i32, i32) {
    %c0_i32 = arith.constant 0 : i32
    %c0_i32_0 = arith.constant 0 : i32
    %c0_i32_1 = arith.constant 0 : i32
    return %c0_i32, %c0_i32_0 : i32, i32
  }
  func.func @transform_28(%arg0: i32) -> (i32, i32) {
    %c0_i32 = arith.constant 0 : i32
    %c0_i32_0 = arith.constant 0 : i32
    return %arg0, %c0_i32 : i32, i32
  }
}

</mosaic_0001>

<bundles_post_ra>
// kernel: tpu_custom_call.1
= control target key start
LH: loop header
LB: loop body
LE: loop exit
PB: predicated region body
PF: predicated region fallthrough
CT: control target
= control target key end

     0   :  { %s2567_s0 = inlined_call_operand.vmem [shape: f32[8,24], index: 0, kind: input, shape index: {}]   ;;  %s2568_s1 = inlined_call_operand.vmem [shape: f32[2,24,32], index: 1, kind: input, shape index: {}]   ;;  %s2569_s2 = inlined_call_operand.vmem [shape: f32[2,1,32], index: 2, kind: input, shape index: {}]   ;;  %s2570_s3 = inlined_call_operand.vmem [shape: f32[3,32,96], index: 3, kind: input, shape index: {}]   ;;  %s2571_s4 = inlined_call_operand.vmem [shape: f32[3,1,96], index: 4, kind: input, shape index: {}]   ;;  %s2572_s5 = inlined_call_operand.vmem [shape: f32[3,32,32], index: 5, kind: input, shape index: {}]   ;;  %s2573_s6 = inlined_call_operand.vmem [shape: f32[3,1,32], index: 6, kind: input, shape index: {}]   ;;  %s2574_s7 = inlined_call_operand.vmem [shape: f32[3,1,32], index: 7, kind: input, shape index: {}]   ;;  %s2575_s8 = inlined_call_operand.vmem [shape: f32[3,1,32], index: 8, kind: input, shape index: {}]   ;;  %s2576_s9 = inlined_call_operand.vmem [shape: f32[3,32,128], index: 9, kind: input, shape index: {}]   ;;  %s2577_s10 = inlined_call_operand.vmem [shape: f32[3,1,128], index: 10, kind: input, shape index: {}]   ;;  %s2578_s11 = inlined_call_operand.vmem [shape: f32[3,128,32], index: 11, kind: input, shape index: {}]   ;;  %s2579_s12 = inlined_call_operand.vmem [shape: f32[3,1,32], index: 12, kind: input, shape index: {}]   ;;  %s2580_s13 = inlined_call_operand.vmem [shape: f32[3,1,32], index: 13, kind: input, shape index: {}]   ;;  %s2581_s14 = inlined_call_operand.vmem [shape: f32[3,1,32], index: 14, kind: input, shape index: {}]   ;;  %s2582_s15 = inlined_call_operand.vmem [shape: f32[1,32], index: 15, kind: input, shape index: {}]   ;;  %s2583_s16 = inlined_call_operand.<no memory space> [shape: f32[1,1], index: 16, kind: input, shape index: {}]   ;;  %s2584_s17 = inlined_call_operand.vmem [shape: f32[32,32], index: 17, kind: input, shape index: {}]   ;;  %s2585_s18 = inlined_call_operand.vmem [shape: f32[1,32], index: 18, kind: input, shape index: {}]   ;;  %s2586_s19 = inlined_call_operand.vmem [shape: f32[1,32], index: 19, kind: input, shape index: {}]   ;;  %s2587_s21 = inlined_call_operand.vmem [shape: f32[24,32], index: 21, kind: input, shape index: {}]   ;;  %s2588_s22 = inlined_call_operand.vmem [shape: f32[1,32], index: 22, kind: input, shape index: {}]   ;;  %s2589_s23 = inlined_call_operand.vmem [shape: f32[1,32], index: 23, kind: input, shape index: {}]   ;;  %s2590_s25 = inlined_call_operand.vmem [shape: f32[1,2], index: 25, kind: input, shape index: {}]   ;;  %s2591_s27 = inlined_call_operand.vmem [shape: f32[32,32], index: 27, kind: input, shape index: {}]   ;;  %s2592_s28 = inlined_call_operand.hbm [shape: f32[8,128], index: 28, kind: output, shape index: {}]   ;;  %s2593_s20 = inlined_call_operand.<no memory space> [shape: f32[1,1], index: 20, kind: input, shape index: {}]   ;;  %s2594_s24 = inlined_call_operand.<no memory space> [shape: f32[1,1], index: 24, kind: input, shape index: {}]   ;;  %s2595_s26 = inlined_call_operand.<no memory space> [shape: f32[1,1], index: 26, kind: input, shape index: {}]  }
   0x1   :  { %2615 = sst [smem:[#allocation9_spill]] %s2567_s0  ;;  %v33_v0 = vstv %s2583_s16  ;;  %v35_v1 = vstv %s2593_s20  ;;  %v37_v2 = vstv %s2594_s24  ;;  %v39_v3 = vstv %s2595_s26 }
   0x2   :  { %2616 = sst [smem:[#allocation10_spill]] %s2568_s1  ;;  %34 = vst [vmem:[#allocation2] sm:$0x1] %v33_v0 }
   0x3   :  { %2617 = sst [smem:[#allocation11_spill]] %s2569_s2  ;;  %36 = vst [vmem:[#allocation3] sm:$0x1] %v35_v1 }
   0x4   :  { %2618 = sst [smem:[#allocation12_spill]] %s2570_s3  ;;  %38 = vst [vmem:[#allocation4] sm:$0x1] %v37_v2 }
   0x5   :  { %2619 = sst [smem:[#allocation13_spill]] %s2571_s4  ;;  %40 = vst [vmem:[#allocation5] sm:$0x1] %v39_v3 }
   0x6   :  { %2620 = sst [smem:[#allocation14_spill]] %s2572_s5 }
   0x7   :  { %2621 = sst [smem:[#allocation15_spill]] %s2573_s6 }
   0x8   :  { %2622 = sst [smem:[#allocation16_spill]] %s2574_s7 }
   0x9   :  { %2623 = sst [smem:[#allocation17_spill]] %s2575_s8 }
   0xa   :  { %2624 = sst [smem:[#allocation18_spill]] %s2576_s9 }
   0xb   :  { %2625 = sst [smem:[#allocation19_spill]] %s2577_s10 }
   0xc   :  { %2626 = sst [smem:[#allocation20_spill]] %s2578_s11 }
   0xd   :  { %2627 = sst [smem:[#allocation21_spill]] %s2579_s12 }
   0xe   :  { %2628 = sst [smem:[#allocation22_spill]] %s2592_s28 }
   0xf   :  { %s2629_s2 = sld [smem:[#allocation10_spill]]  ;;  %vm106_vm0 = vcmask 195584  }
  0x10   :  { %s2630_s9 = sld [smem:[#allocation9_spill]] }
  0x11   :  { %s2631_s0 = sld [smem:[#allocation12_spill]] }
  0x15   :  { %v101_v4 = vld [vmem:[%s2629_s2 + $0x10] sm:$0xff]  ;;  %v100_v5 = vld [vmem:[%s2629_s2 + $0x8] sm:$0xff]  ;;  %v99_v7 = vld [vmem:[%s2629_s2] sm:$0xff] }
  0x16   :  { %v1559_v6 = vld [vmem:[%s2629_s2 + $0x28] sm:$0xff]  ;;  %123 = vmatpush.msra.mxu0 %v101_v4  ;;  %v1558_v8 = vld [vmem:[%s2629_s2 + $0x20] sm:$0xff]  ;;  %v1557_v10 = vld [vmem:[%s2629_s2 + $0x18] sm:$0xff] }
  0x17   :  { %152 = vmatpush.msra.mxu3 %v1559_v6  ;;  %v98_v9 = vld [vmem:[%s2630_s9] sm:$0xff]  ;;  %v166_v11 = vld [vmem:[%s2631_s0 + $0x18] sm:$0xff]  ;;  %v165_v12 = vld [vmem:[%s2631_s0 + $0x10] sm:$0xff] }
  0x18   :  { %124 = vmatpush.msra.mxu0 %v100_v5  ;;  %190 = vmatpush.msra.mxu2 %v166_v11 }
  0x19   :  { %153 = vmatpush.msra.mxu3 %v1558_v8 }
  0x1a   :  { %125 = vmatpush.msra.mxu0 %v99_v7  ;;  %191 = vmatpush.msra.mxu2 %v165_v12 }
  0x1b   :  { %154 = vmatpush.msra.mxu3 %v1557_v10  ;;  %1556 = vmatmul.msk.f32.vlgmr.msra.gmra.mxu0 %vm106_vm0, %v98_v9 }
  0x1c   :  { %1561 = vmatmul.msk.f32.vlgmr.msra.gmra.mxu3 %vm106_vm0, %v98_v9 }
  0x1d   :  { %41 = vsyncpa [#allocation7], 0  ;;  %v164_v13 = vld [vmem:[%s2631_s0 + $0x8] sm:$0xff]  ;;  %v163_v14 = vld [vmem:[%s2631_s0] sm:$0xff]  ;;  %s2632_s1 = sld [smem:[#allocation11_spill]]  ;;  %vm171_vm1 = vcmask 261120  }
  0x1e   :  { %192 = vmatpush.msra.mxu2 %v164_v13  ;;  %s2633_s30 = sld [smem:[#allocation13_spill]]  ;;  %s2613_s3 = smov 96   ;;  %v2023_v28 = vld [vmem:[%s2591_s27 + $0x18] sm:$0xff]  ;;  %v2028_v29 = vld [vmem:[%s2591_s27 + $0x10] sm:$0xff]  ;;  %v2034_v30 = vld [vmem:[%s2591_s27 + $0x8] sm:$0xff] }
  0x1f   :  { %s2609_s6 = smov 64   ;;  %s2611_s10 = smov 32   ;;  %249 = vmatpush.msrb.mxu3 %v2023_v28  ;;  %v2048_v37 = vld [vmem:[%s2591_s27] sm:$0xff] }
  0x20   :  { %193 = vmatpush.msra.mxu2 %v163_v14  ;;  %s2634_s26 = sld [smem:[#allocation14_spill]]  ;;  %s2642_s24 = smov 32  }
  0x21   :  { %250 = vmatpush.msrb.mxu3 %v2028_v29  ;;  %s2635_s20 = sld [smem:[#allocation15_spill]]  ;;  %s2644_s12 = smov 96  }
  0x22   :  { %s2636_s27 = sld [smem:[#allocation18_spill]] }
  0x23   :  { %v1677_v15 = vld [vmem:[%s2632_s1] ss:$0 sm:$0xff]  ;;  %v1678_v18 = vld [vmem:[%s2632_s1 + $0x1] ss:$0 sm:$0xff]  ;;  %251 = vmatpush.msrb.mxu3 %v2034_v30  ;;  %s2637_s7 = sld [smem:[#allocation20_spill]]  ;;  %s2643_s1 = smov 64  }
  0x24   :  { %v1679_v22 = vld [vmem:[%s2633_s30] ss:$0 sm:$0xff]  ;;  %s2638_s2 = sld [smem:[#allocation16_spill]] }
  0x25   :  { %252 = vmatpush.msrb.mxu3 %v2048_v37  ;;  %s2639_s4 = sld [smem:[#allocation17_spill]] }
  0x26   :  { %v321_v46 = vld [vmem:[%s2634_s26 + $0x18] sm:$0xff]  ;;  %v320_v47 = vld [vmem:[%s2634_s26 + $0x10] sm:$0xff]  ;;  %v319_v48 = vld [vmem:[%s2634_s26 + $0x8] sm:$0xff]  ;;  %s2641_s8 = sld [smem:[#allocation21_spill]] }
  0x27   :  { %344 = vmatpush.msrb.mxu0 %v321_v46  ;;  %v318_v49 = vld [vmem:[%s2634_s26] sm:$0xff] }
  0x29   :  { %345 = vmatpush.msrb.mxu0 %v320_v47 }
  0x2b   :  { %346 = vmatpush.msrb.mxu0 %v319_v48 }
  0x2d   :  { %347 = vmatpush.msrb.mxu0 %v318_v49 }
  0x2f   :  { %647 = vmatpush.msra.mxu0 %v2023_v28 }
  0x31   :  { %648 = vmatpush.msra.mxu0 %v2028_v29 }
  0x33   :  { %649 = vmatpush.msra.mxu0 %v2034_v30 }
  0x35   :  { %650 = vmatpush.msra.mxu0 %v2048_v37 }
  0x98   :  { %v127_v16 = vpop.f32.mrf.mxu0 }
  0x99   :  { %v2000_v17 = vadd.f32 %v1677_v15, %v127_v16 }
  0x9b   :  { %1562 = vmatmul.msk.f32.vlgmr.msra.gmra.mxu2 %vm171_vm1, %v2000_v17 }
  0x9f   :  { %v156_v19 = vpop.f32.mrf.mxu3 }
  0xa0   :  { %v2007_v20 = vadd.f32 %v1678_v18, %v156_v19 }
  0xa3   :  { %1563 = vmatmul.msk.f32.gmra.mxu2 %vm171_vm1, %v2007_v20 }
 0x11e   :  { %v195_v21 = vpop.f32.mrf.mxu2 }
 0x11f   :  { %v196_v25 = vadd.f32 %v1679_v22, %v195_v21 }
 0x126   :  { %v198_v23 = vpop.f32.mrf.mxu2 }
 0x127   :  { %v199_v24 = vadd.f32 %v1679_v22, %v198_v23  ;;  %v1680_v22 = vld [vmem:[%s2635_s20] ss:$0 sm:$0xff] }
 0x129   :  { %205 = vrot.lane.b32.xlu0 %v199_v24, %s2613_s3 }
 0x131   :  { %203 = vrot.lane.b32.xlu0 %v196_v25, %s2613_s3 }
 0x139   :  { %209 = vrot.lane.b32.xlu0 %v199_v24, %s2609_s6 }
 0x19b   :  { %v206_v26 = vpop.permute.xlu0 %205 }
 0x19c   :  { %213 = vrot.lane.b32.xlu1 %v206_v26, %s2611_s10 }
 0x1a3   :  { %v204_v27 = vpop.permute.xlu0 %203 }
 0x1a4   :  { %215 = vrot.lane.b32.xlu1 %v204_v27, %s2611_s10 }
 0x1ab   :  { %v210_v36 = vpop.permute.xlu0 %209 }
 0x1ac   :  { %207 = vrot.lane.b32.xlu1 %v196_v25, %s2609_s6 }
 0x20e   :  { %v214_v31 = vpop.permute.xlu1 %213 }
 0x20f   :  { %v219_v32 = vsub.f32 %v196_v25, %v214_v31 }
 0x211   :  { %223 = vrot.lane.b32.xlu2 %v219_v32, %s2613_s3 }
 0x216   :  { %v216_v33 = vpop.permute.xlu1 %215 }
 0x217   :  { %v220_v34 = vsub.f32 %v199_v24, %v216_v33 }
 0x219   :  { %225 = vrot.lane.b32.xlu2 %v220_v34, %s2613_s3  ;;  %v1801_v34 = vmov 32.0  }
 0x21e   :  { %v2040_v35 = vpop.permute.xlu1 %207 }
 0x21f   :  { %300 = vrot.lane.b32.xlu0 %v2040_v35, %s2609_s6 }
 0x221   :  { %298 = vrot.lane.b32.xlu2 %v210_v36, %s2609_s6 }
 0x26b   :  { %v224_v38 = vpop.permute.xlu2 %223 }
 0x26c   :  { %v229_v39 = vmul.f32 %v224_v38, %v196_v25 }
 0x26e   :  { %1564 = vmatmul.msk.f32.vlgmr.msrb.gmra.mxu3 %vm171_vm1, %v229_v39 }
 0x273   :  { %v226_v40 = vpop.permute.xlu2 %225 }
 0x274   :  { %v230_v41 = vmul.f32 %v226_v40, %v199_v24 }
 0x276   :  { %1565 = vmatmul.msk.f32.gmra.mxu3 %vm171_vm1, %v230_v41 }
 0x27b   :  { %v299_v42 = vpop.permute.xlu2 %298 }
 0x27c   :  { %v304_v43 = vsub.f32 %v196_v25, %v299_v42 }
 0x27e   :  { %308 = vrot.lane.b32.xlu1 %v304_v43, %s2609_s6 }
 0x291   :  { %v301_v44 = vpop.permute.xlu0 %300 }
 0x292   :  { %v305_v45 = vsub.f32 %v199_v24, %v301_v44 }
 0x294   :  { %310 = vrot.lane.b32.xlu2 %v305_v45, %s2609_s6  ;;  %s2640_s6 = sld [smem:[#allocation19_spill]] }
 0x2ee   :  { %v311_v16 = vpop.permute.xlu2 %310 }
 0x2f0   :  { %v309_v5 = vpop.permute.xlu1 %308 }
 0x2f1   :  { %v254_v50 = vpop.f32.mrf.mxu3 }
 0x2f2   :  { %v1566_v51 = vmul.f32 -1.442695, %v254_v50  ;;  %v423_v50 = vld [vmem:[%s2636_s27 + $0x18] sm:$0xff] }
 0x2f3   :  { %446 = vmatpush.msra.mxu1 %v423_v50 }
 0x2f4   :  { %1713 = vpow2.f32 %v1566_v51  ;;  %v422_v51 = vld [vmem:[%s2636_s27 + $0x10] sm:$0xff] }
 0x2f5   :  { %447 = vmatpush.msra.mxu1 %v422_v51 }
 0x2f9   :  { %v257_v52 = vpop.f32.mrf.mxu3 }
 0x2fa   :  { %v1714_v53 = vpop.eup %1713  ;;  %v1567_v54 = vmul.f32 -1.442695, %v257_v52  ;;  %v421_v52 = vld [vmem:[%s2636_s27 + $0x8] sm:$0xff] }
 0x2fb   :  { %v266_v55 = vadd.f32 1.0, %v1714_v53  ;;  %448 = vmatpush.msra.mxu1 %v421_v52  ;;  %v420_v53 = vld [vmem:[%s2636_s27] sm:$0xff] }
 0x2fc   :  { %1715 = vpow2.f32 %v1567_v54 }
 0x2fd   :  { %1717 = vrcp.f32 %v266_v55  ;;  %v279_v61 = vand.u32 2147483648, %v266_v55  ;;  %v277_v63 = vand.u32 2147483647, %v266_v55  ;;  %vm273_vm3 = vweird.f32 %v266_v55  ;;  %449 = vmatpush.msra.mxu1 %v420_v53 }
 0x2ff   :  { %v280_v2 = vor.u32 1.1754944e-38, %v279_v61  ;;  %vm278_vm5 = vcmp.eq.f32.partialorder %v277_v63, 8.507059e+37 }
 0x302   :  { %v1716_v56 = vpop.eup %1715 }
 0x303   :  { %v1718_v57 = vpop.eup %1717  ;;  %v267_v58 = vadd.f32 1.0, %v1716_v56 }
 0x304   :  { %v269_v59 = vmul.f32 %v1718_v57, %v266_v55  ;;  %vm274_vm2 = vweird.f32 %v1718_v57 }
 0x305   :  { %1719 = vrcp.f32 %v267_v58  ;;  %vm275_vm4 = vmor %vm273_vm3, %vm274_vm2  ;;  %v294_v9 = vand.u32 2147483648, %v267_v58  ;;  %v292_v12 = vand.u32 2147483647, %v267_v58  ;;  %vm288_vm7 = vweird.f32 %v267_v58 }
 0x306   :  { %v270_v60 = vsub.f32 1.0, %v269_v59  ;;  %1721 = vrcp.f32 %v1801_v34  ;;  %v472_v59 = vld [vmem:[%s2637_s7 + $0x68] sm:$0xff] }
 0x307   :  { %v295_v14 = vor.u32 1.1754944e-38, %v294_v9  ;;  %vm293_vm9 = vcmp.eq.f32.partialorder %v292_v12, 8.507059e+37 }
 0x308   :  { %v271_v62 = vmul.f32 %v1718_v57, %v270_v60 }
 0x30a   :  { %v272_v0 = vadd.f32 %v1718_v57, %v271_v62  ;;  %v471_v62 = vld [vmem:[%s2637_s7 + $0x60] sm:$0xff] }
 0x30b   :  { %v1720_v1 = vpop.eup %1719 }
 0x30c   :  { %v284_v3 = vmul.f32 %v1720_v1, %v267_v58  ;;  %v276_v4 = vsel %vm275_vm4, %v1718_v57, %v272_v0  ;;  %vm289_vm6 = vweird.f32 %v1720_v1  ;;  %v474_v57 = vld [vmem:[%s2637_s7 + $0x78] sm:$0xff]  ;;  %v473_v58 = vld [vmem:[%s2637_s7 + $0x70] sm:$0xff] }
 0x30d   :  { %v281_v6 = vsel %vm278_vm5, %v280_v2, %v276_v4  ;;  %vm290_vm8 = vmor %vm288_vm7, %vm289_vm6  ;;  %479 = vmatpush.msrb.mxu2 %v474_v57 }
 0x30e   :  { %v285_v7 = vsub.f32 1.0, %v284_v3  ;;  %v314_v8 = vmul.f32 %v309_v5, %v281_v6  ;;  %v469_v3 = vld [vmem:[%s2637_s7 + $0x50] sm:$0xff]  ;;  %v468_v5 = vld [vmem:[%s2637_s7 + $0x48] sm:$0xff] }
 0x30f   :  { %480 = vmatpush.msrb.mxu2 %v473_v58 }
 0x310   :  { %v316_v10 = vadd.f32 %v314_v8, %v210_v36  ;;  %v286_v11 = vmul.f32 %v1720_v1, %v285_v7  ;;  %v467_v7 = vld [vmem:[%s2637_s7 + $0x40] sm:$0xff] }
 0x311   :  { %481 = vmatpush.msrb.mxu2 %v472_v59 }
 0x312   :  { %1568 = vmatmul.msk.f32.vlgmr.msrb.gmra.mxu0 %vm171_vm1, %v316_v10  ;;  %v287_v13 = vadd.f32 %v1720_v1, %v286_v11  ;;  %v466_v10 = vld [vmem:[%s2637_s7 + $0x38] sm:$0xff] }
 0x313   :  { %482 = vmatpush.msrb.mxu2 %v471_v62 }
 0x314   :  { %v291_v15 = vsel %vm290_vm8, %v1720_v1, %v287_v13  ;;  %v470_v1 = vld [vmem:[%s2637_s7 + $0x58] sm:$0xff]  ;;  %v1681_v13 = vld [vmem:[%s2638_s2] ss:$0 sm:$0xff] }
 0x315   :  { %v296_v18 = vsel %vm293_vm9, %v295_v14, %v291_v15  ;;  %483 = vmatpush.msrb.mxu2 %v470_v1  ;;  %v465_v14 = vld [vmem:[%s2637_s7 + $0x30] sm:$0xff]  ;;  %v1575_v1 = vld [vmem:[%s2631_s0 + $0x38] sm:$0xff] }
 0x316   :  { %v315_v19 = vmul.f32 %v311_v16, %v296_v18  ;;  %588 = vmatpush.msra.mxu3 %v1575_v1 }
 0x317   :  { %484 = vmatpush.msrb.mxu2 %v469_v3  ;;  %v1573_v3 = vld [vmem:[%s2631_s0 + $0x28] sm:$0xff] }
 0x318   :  { %v317_v21 = vadd.f32 %v315_v19, %v2040_v35  ;;  %v1722_v35 = vpop.eup %1721  ;;  %v1682_v19 = vld [vmem:[%s2639_s4] ss:$0 sm:$0xff] }
 0x319   :  { %v366_v36 = vmul.f32 32.0, %v1722_v35  ;;  %vm370_vm10 = vweird.f32 %v1722_v35  ;;  %485 = vmatpush.msrb.mxu2 %v468_v5 }
 0x31a   :  { %1569 = vmatmul.msk.f32.gmra.mxu0 %vm171_vm1, %v317_v21  ;;  %v464_v21 = vld [vmem:[%s2637_s7 + $0x28] sm:$0xff] }
 0x31b   :  { %v367_v38 = vsub.f32 1.0, %v366_v36  ;;  %486 = vmatpush.msrb.mxu2 %v467_v7  ;;  %v461_v36 = vld [vmem:[%s2637_s7 + $0x10] sm:$0xff] }
 0x31d   :  { %v368_v39 = vmul.f32 %v1722_v35, %v367_v38  ;;  %487 = vmatpush.msrb.mxu2 %v466_v10  ;;  %v460_v38 = vld [vmem:[%s2637_s7 + $0x8] sm:$0xff] }
 0x31f   :  { %v369_v40 = vadd.f32 %v1722_v35, %v368_v39  ;;  %488 = vmatpush.msrb.mxu2 %v465_v14  ;;  %v459_v39 = vld [vmem:[%s2637_s7] sm:$0xff] }
 0x321   :  { %v2081_v41 = vsel %vm370_vm10, %v1722_v35, %v369_v40  ;;  %489 = vmatpush.msrb.mxu2 %v464_v21  ;;  %v1683_v40 = vld [vmem:[%s2640_s6] ss:$0 sm:$0xff] }
 0x322   :  { %v1685_v21 = vld [vmem:[%s2580_s13] ss:$0 sm:$0xff] }
 0x38f   :  { %v349_v23 = vpop.f32.mrf.mxu0 }
 0x390   :  { %v350_v24 = vadd.f32 %v1680_v22, %v349_v23 }
 0x392   :  { %v355_v25 = vadd.f32 %v350_v24, %v2000_v17  ;;  %v463_v24 = vld [vmem:[%s2637_s7 + $0x20] sm:$0xff] }
 0x393   :  { %490 = vmatpush.msrb.mxu2 %v463_v24 }
 0x394   :  { %v359_v26 = vsel %vm171_vm1, %v355_v25, 0.0 }
 0x395   :  { %360 = vadd.xlane.f32.xlu0 %v359_v26 }
 0x397   :  { %v352_v27 = vpop.f32.mrf.mxu0 }
 0x398   :  { %v353_v31 = vadd.f32 %v1680_v22, %v352_v27  ;;  %v462_v27 = vld [vmem:[%s2637_s7 + $0x18] sm:$0xff] }
 0x399   :  { %491 = vmatpush.msrb.mxu2 %v462_v27 }
 0x39a   :  { %v356_v32 = vadd.f32 %v353_v31, %v2007_v20 }
 0x39b   :  { %492 = vmatpush.msrb.mxu2 %v461_v36 }
 0x39c   :  { %v362_v33 = vsel %vm171_vm1, %v356_v32, 0.0 }
 0x39d   :  { %363 = vadd.xlane.f32.xlu1 %v362_v33  ;;  %493 = vmatpush.msrb.mxu2 %v460_v38 }
 0x39f   :  { %494 = vmatpush.msrb.mxu2 %v459_v39  ;;  %v1687_v39 = vld [vmem:[%s2633_s30 + $0x1] ss:$0 sm:$0xff] }
 0x408   :  { %v361_v17 = vpop.xlane.xlu0 %360 }
 0x409   :  { %v372_v42 = vmul.f32 %v2081_v41, %v361_v17 }
 0x40b   :  { %v374_v43 = vsub.f32 %v355_v25, %v372_v42 }
 0x40d   :  { %v376_v44 = vmul.f32 %v374_v43, %v374_v43 }
 0x40f   :  { %v378_v20 = vsel %vm171_vm1, %v376_v44, 0.0 }
 0x410   :  { %379 = vadd.xlane.f32.xlu2 %v378_v20  ;;  %v364_v45 = vpop.xlane.xlu1 %363 }
 0x411   :  { %v373_v46 = vmul.f32 %v2081_v41, %v364_v45 }
 0x413   :  { %v2086_v47 = vsub.f32 %v356_v32, %v373_v46  ;;  %v1684_v46 = vld [vmem:[%s2641_s8] ss:$0 sm:$0xff] }
 0x415   :  { %v377_v48 = vmul.f32 %v2086_v47, %v2086_v47 }
 0x417   :  { %v381_v49 = vsel %vm171_vm1, %v377_v48, 0.0 }
 0x418   :  { %382 = vadd.xlane.f32.xlu2 %v381_v49 }
 0x483   :  { %v380_v54 = vpop.xlane.xlu2 %379 }
 0x484   :  { %v384_v55 = vmul.f32 %v380_v54, %v2081_v41 }
 0x486   :  { %v386_v56 = vadd.f32 1e-05, %v384_v55 }
 0x488   :  { %1723 = vrsqrt.f32 %v386_v56  ;;  %vm394_vm12 = vweird.f32 %v386_v56 }
 0x48b   :  { %v383_v60 = vpop.xlane.xlu2 %382 }
 0x48c   :  { %v385_v61 = vmul.f32 %v383_v60, %v2081_v41 }
 0x48e   :  { %v1724_v63 = vpop.eup %1723  ;;  %v387_v0 = vadd.f32 1e-05, %v385_v61 }
 0x48f   :  { %v389_v2 = vmul.f32 %v1724_v63, %v386_v56  ;;  %vm395_vm11 = vweird.f32 %v1724_v63 }
 0x490   :  { %1725 = vrsqrt.f32 %v387_v0  ;;  %vm396_vm13 = vmor %vm394_vm12, %vm395_vm11  ;;  %vm404_vm15 = vweird.f32 %v387_v0 }
 0x491   :  { %v390_v4 = vmul.f32 %v1724_v63, %v389_v2  ;;  %v1574_v2 = vld [vmem:[%s2631_s0 + $0x30] sm:$0xff] }
 0x492   :  { %589 = vmatpush.msra.mxu3 %v1574_v2 }
 0x493   :  { %v391_v6 = vmul.f32 0.5, %v390_v4  ;;  %v1572_v4 = vld [vmem:[%s2631_s0 + $0x20] sm:$0xff] }
 0x494   :  { %590 = vmatpush.msra.mxu3 %v1573_v3 }
 0x495   :  { %v392_v8 = vsub.f32 1.5, %v391_v6 }
 0x496   :  { %v1726_v9 = vpop.eup %1725  ;;  %591 = vmatpush.msra.mxu3 %v1572_v4 }
 0x497   :  { %v393_v11 = vmul.f32 %v1724_v63, %v392_v8  ;;  %v399_v12 = vmul.f32 %v1726_v9, %v387_v0  ;;  %vm405_vm14 = vweird.f32 %v1726_v9 }
 0x498   :  { %vm406_vm2 = vmor %vm404_vm15, %vm405_vm14 }
 0x499   :  { %v397_v15 = vsel %vm396_vm13, %v1724_v63, %v393_v11  ;;  %v400_v16 = vmul.f32 %v1726_v9, %v399_v12 }
 0x49a   :  { %v408_v18 = vmul.f32 %v397_v15, %v374_v43 }
 0x49b   :  { %v401_v22 = vmul.f32 0.5, %v400_v16 }
 0x49c   :  { %v413_v23 = vmul.f32 %v1681_v13, %v408_v18 }
 0x49d   :  { %v402_v25 = vsub.f32 1.5, %v401_v22 }
 0x49e   :  { %v418_v26 = vadd.f32 %v1682_v19, %v413_v23 }
 0x49f   :  { %v403_v31 = vmul.f32 %v1726_v9, %v402_v25  ;;  %v1686_v25 = vld [vmem:[%s2581_s14] ss:$0 sm:$0xff] }
 0x4a0   :  { %1570 = vmatmul.msk.f32.vlgmr.msra.gmra.mxu1 %vm171_vm1, %v418_v26 }
 0x4a1   :  { %v407_v32 = vsel %vm406_vm2, %v1726_v9, %v403_v31 }
 0x4a2   :  { %v409_v33 = vmul.f32 %v407_v32, %v2086_v47 }
 0x4a4   :  { %v414_v34 = vmul.f32 %v1681_v13, %v409_v33 }
 0x4a6   :  { %v419_v35 = vadd.f32 %v1682_v19, %v414_v34 }
 0x4a8   :  { %1571 = vmatmul.msk.f32.gmra.mxu1 %vm171_vm1, %v419_v35 }
 0x51d   :  { %v451_v17 = vpop.f32.mrf.mxu1 }
 0x51e   :  { %v452_v42 = vadd.f32 %v1683_v40, %v451_v17 }
 0x520   :  { %v457_v43 = vmax.f32 %v452_v42, 0.0 }
 0x522   :  { %495 = vmatmul.f32.vlgmr.msrb.gmra.mxu2 %v457_v43 }
 0x525   :  { %v454_v44 = vpop.f32.mrf.mxu1 }
 0x526   :  { %v455_v20 = vadd.f32 %v1683_v40, %v454_v44 }
 0x528   :  { %v458_v45 = vmax.f32 %v455_v20, 0.0 }
 0x52a   :  { %498 = vmatmul.f32.gmra.mxu2 %v458_v45 }
 0x5a5   :  { %v496_v47 = vpop.f32.mrf.mxu2 }
 0x5a6   :  { %v497_v48 = vadd.f32 %v1684_v46, %v496_v47 }
 0x5a8   :  { %v502_v49 = vadd.f32 %v497_v48, %v418_v26 }
 0x5aa   :  { %v506_v50 = vsel %vm171_vm1, %v502_v49, 0.0 }
 0x5ab   :  { %507 = vadd.xlane.f32.xlu0 %v506_v50 }
 0x5ad   :  { %v499_v51 = vpop.f32.mrf.mxu2 }
 0x5ae   :  { %v500_v52 = vadd.f32 %v1684_v46, %v499_v51 }
 0x5b0   :  { %v503_v53 = vadd.f32 %v500_v52, %v419_v35 }
 0x5b2   :  { %v509_v54 = vsel %vm171_vm1, %v503_v53, 0.0 }
 0x5b3   :  { %510 = vadd.xlane.f32.xlu1 %v509_v54 }
 0x61e   :  { %v508_v55 = vpop.xlane.xlu0 %507 }
 0x61f   :  { %v512_v56 = vmul.f32 %v508_v55, %v2081_v41 }
 0x621   :  { %v514_v57 = vsub.f32 %v502_v49, %v512_v56 }
 0x623   :  { %v516_v58 = vmul.f32 %v514_v57, %v514_v57 }
 0x625   :  { %v518_v59 = vsel %vm171_vm1, %v516_v58, 0.0  ;;  %v1585_v58 = vld [vmem:[%s2634_s26 + $0x30] sm:$0xff] }
 0x626   :  { %519 = vadd.xlane.f32.xlu2 %v518_v59  ;;  %v511_v60 = vpop.xlane.xlu1 %510  ;;  %v1584_v59 = vld [vmem:[%s2634_s26 + $0x28] sm:$0xff] }
 0x627   :  { %v513_v61 = vmul.f32 %v511_v60, %v2081_v41 }
 0x629   :  { %v515_v62 = vsub.f32 %v503_v53, %v513_v61  ;;  %v1583_v61 = vld [vmem:[%s2634_s26 + $0x20] sm:$0xff] }
 0x62b   :  { %v517_v63 = vmul.f32 %v515_v62, %v515_v62 }
 0x62d   :  { %v521_v0 = vsel %vm171_vm1, %v517_v63, 0.0 }
 0x62e   :  { %522 = vadd.xlane.f32.xlu0 %v521_v0 }
 0x699   :  { %v520_v5 = vpop.xlane.xlu2 %519 }
 0x69a   :  { %v524_v6 = vmul.f32 %v520_v5, %v2081_v41 }
 0x69c   :  { %v526_v7 = vadd.f32 1e-05, %v524_v6 }
 0x69e   :  { %1727 = vrsqrt.f32 %v526_v7  ;;  %vm534_vm4 = vweird.f32 %v526_v7 }
 0x6a1   :  { %v523_v8 = vpop.xlane.xlu0 %522 }
 0x6a2   :  { %v525_v9 = vmul.f32 %v523_v8, %v2081_v41 }
 0x6a4   :  { %v1728_v10 = vpop.eup %1727  ;;  %v527_v11 = vadd.f32 1e-05, %v525_v9 }
 0x6a5   :  { %v529_v12 = vmul.f32 %v1728_v10, %v526_v7  ;;  %vm535_vm3 = vweird.f32 %v1728_v10 }
 0x6a6   :  { %1729 = vrsqrt.f32 %v527_v11  ;;  %vm536_vm5 = vmor %vm534_vm4, %vm535_vm3  ;;  %vm544_vm7 = vweird.f32 %v527_v11 }
 0x6a7   :  { %v530_v13 = vmul.f32 %v1728_v10, %v529_v12 }
 0x6a9   :  { %v531_v14 = vmul.f32 0.5, %v530_v13 }
 0x6ab   :  { %v532_v15 = vsub.f32 1.5, %v531_v14 }
 0x6ac   :  { %v1730_v16 = vpop.eup %1729 }
 0x6ad   :  { %v533_v18 = vmul.f32 %v1728_v10, %v532_v15  ;;  %v539_v19 = vmul.f32 %v1730_v16, %v527_v11  ;;  %vm545_vm6 = vweird.f32 %v1730_v16 }
 0x6ae   :  { %vm546_vm8 = vmor %vm544_vm7, %vm545_vm6 }
 0x6af   :  { %v537_v22 = vsel %vm536_vm5, %v1728_v10, %v533_v18  ;;  %v540_v23 = vmul.f32 %v1730_v16, %v539_v19 }
 0x6b0   :  { %v548_v24 = vmul.f32 %v537_v22, %v514_v57  ;;  %v1586_v57 = vld [vmem:[%s2634_s26 + $0x38] sm:$0xff] }
 0x6b1   :  { %v541_v26 = vmul.f32 0.5, %v540_v23  ;;  %744 = vmatpush.msrb.mxu1 %v1586_v57  ;;  %v1595_v57 = vld [vmem:[%s2636_s27 + $0x38] sm:$0xff] }
 0x6b2   :  { %v553_v27 = vmul.f32 %v1685_v21, %v548_v24  ;;  %843 = vmatpush.msrb.mxu3 %v1595_v57 }
 0x6b3   :  { %v542_v31 = vsub.f32 1.5, %v541_v26  ;;  %745 = vmatpush.msrb.mxu1 %v1585_v58  ;;  %v1594_v58 = vld [vmem:[%s2636_s27 + $0x30] sm:$0xff] }
 0x6b4   :  { %v2194_v32 = vadd.f32 %v1686_v25, %v553_v27  ;;  %844 = vmatpush.msrb.mxu3 %v1594_v58 }
 0x6b5   :  { %v543_v33 = vmul.f32 %v1730_v16, %v542_v31  ;;  %746 = vmatpush.msrb.mxu1 %v1584_v59  ;;  %v1593_v59 = vld [vmem:[%s2636_s27 + $0x28] sm:$0xff] }
 0x6b6   :  { %1577 = vmatmul.msk.f32.vlgmr.msra.gmra.mxu3 %vm171_vm1, %v2194_v32 }
 0x6b7   :  { %v547_v34 = vsel %vm546_vm8, %v1730_v16, %v543_v33  ;;  %747 = vmatpush.msrb.mxu1 %v1583_v61  ;;  %845 = vmatpush.msrb.mxu3 %v1593_v59 }
 0x6b8   :  { %v549_v35 = vmul.f32 %v547_v34, %v515_v62 }
 0x6ba   :  { %v554_v36 = vmul.f32 %v1685_v21, %v549_v35 }
 0x6bc   :  { %v2198_v38 = vadd.f32 %v1686_v25, %v554_v36 }
 0x6be   :  { %1578 = vmatmul.msk.f32.gmra.mxu3 %vm171_vm1, %v2198_v38 }
 0x739   :  { %v593_v40 = vpop.f32.mrf.mxu3 }
 0x73a   :  { %v594_v17 = vadd.f32 %v1687_v39, %v593_v40 }
 0x73c   :  { %601 = vrot.lane.b32.xlu2 %v594_v17, %s2613_s3 }
 0x741   :  { %v596_v42 = vpop.f32.mrf.mxu3 }
 0x742   :  { %v597_v43 = vadd.f32 %v1687_v39, %v596_v42 }
 0x744   :  { %603 = vrot.lane.b32.xlu1 %v597_v43, %s2613_s3 }
 0x796   :  { %v602_v44 = vpop.permute.xlu2 %601 }
 0x797   :  { %613 = vrot.lane.b32.xlu1 %v602_v44, %s2642_s24 }
 0x79f   :  { %607 = vrot.lane.b32.xlu1 %v597_v43, %s2643_s1 }
 0x7b6   :  { %v604_v20 = vpop.permute.xlu1 %603 }
 0x7b7   :  { %611 = vrot.lane.b32.xlu0 %v604_v20, %s2642_s24 }
 0x809   :  { %v614_v45 = vpop.permute.xlu1 %613 }
 0x80a   :  { %v618_v46 = vsub.f32 %v597_v43, %v614_v45 }
 0x80c   :  { %623 = vrot.lane.b32.xlu2 %v618_v46, %s2613_s3 }
 0x811   :  { %v608_v47 = vpop.permute.xlu1 %607 }
 0x814   :  { %696 = vrot.lane.b32.xlu2 %v608_v47, %s2643_s1 }
 0x829   :  { %v612_v48 = vpop.permute.xlu0 %611 }
 0x82a   :  { %v617_v49 = vsub.f32 %v594_v17, %v612_v48 }
 0x82c   :  { %621 = vrot.lane.b32.xlu0 %v617_v49, %s2613_s3 }
 0x834   :  { %605 = vrot.lane.b32.xlu0 %v594_v17, %s2643_s1 }
 0x866   :  { %v624_v50 = vpop.permute.xlu2 %623 }
 0x867   :  { %v628_v56 = vmul.f32 %v624_v50, %v597_v43 }
 0x86e   :  { %v697_v51 = vpop.permute.xlu2 %696 }
 0x86f   :  { %v702_v52 = vsub.f32 %v594_v17, %v697_v51 }
 0x871   :  { %706 = vrot.lane.b32.xlu0 %v702_v52, %s2643_s1 }
 0x89e   :  { %v622_v53 = vpop.permute.xlu0 %621 }
 0x89f   :  { %v627_v54 = vmul.f32 %v622_v53, %v594_v17  ;;  %v1688_v17 = vld [vmem:[%s2635_s20 + $0x1] ss:$0 sm:$0xff] }
 0x8a1   :  { %1579 = vmatmul.msk.f32.vlgmr.msra.gmra.mxu0 %vm171_vm1, %v627_v54 }
 0x8a6   :  { %v606_v55 = vpop.permute.xlu0 %605 }
 0x8a7   :  { %698 = vrot.lane.b32.xlu1 %v606_v55, %s2643_s1 }
 0x8a9   :  { %1580 = vmatmul.msk.f32.gmra.mxu0 %vm171_vm1, %v628_v56 }
 0x8e3   :  { %v707_v12 = vpop.permute.xlu0 %706 }
 0x919   :  { %v699_v60 = vpop.permute.xlu1 %698 }
 0x91a   :  { %v703_v62 = vsub.f32 %v597_v43, %v699_v60  ;;  %v1592_v60 = vld [vmem:[%s2636_s27 + $0x20] sm:$0xff] }
 0x91b   :  { %846 = vmatpush.msrb.mxu3 %v1592_v60 }
 0x91c   :  { %708 = vrot.lane.b32.xlu2 %v703_v62, %s2643_s1 }
 0x91e   :  { %v652_v63 = vpop.f32.mrf.mxu0 }
 0x91f   :  { %v1581_v0 = vmul.f32 -1.442695, %v652_v63 }
 0x921   :  { %1731 = vpow2.f32 %v1581_v0 }
 0x926   :  { %v655_v16 = vpop.f32.mrf.mxu0 }
 0x927   :  { %v1732_v1 = vpop.eup %1731  ;;  %v1582_v18 = vmul.f32 -1.442695, %v655_v16 }
 0x928   :  { %v664_v2 = vadd.f32 1.0, %v1732_v1 }
 0x92a   :  { %1733 = vrcp.f32 %v664_v2  ;;  %v677_v6 = vand.u32 2147483648, %v664_v2  ;;  %v675_v8 = vand.u32 2147483647, %v664_v2  ;;  %vm671_vm10 = vweird.f32 %v664_v2 }
 0x92b   :  { %1735 = vpow2.f32 %v1582_v18  ;;  %v1611_v18 = vld [vmem:[%s2637_s7 + $0xe0] sm:$0xff] }
 0x92c   :  { %v678_v10 = vor.u32 1.1754944e-38, %v677_v6  ;;  %vm676_vm12 = vcmp.eq.f32.partialorder %v675_v8, 8.507059e+37  ;;  %v1689_v6 = vld [vmem:[%s2638_s2 + $0x1] ss:$0 sm:$0xff] }
 0x930   :  { %v1734_v3 = vpop.eup %1733 }
 0x931   :  { %v667_v4 = vmul.f32 %v1734_v3, %v664_v2  ;;  %vm672_vm9 = vweird.f32 %v1734_v3  ;;  %v1736_v19 = vpop.eup %1735 }
 0x932   :  { %vm673_vm11 = vmor %vm671_vm10, %vm672_vm9  ;;  %v665_v21 = vadd.f32 1.0, %v1736_v19 }
 0x933   :  { %v668_v5 = vsub.f32 1.0, %v667_v4 }
 0x934   :  { %1737 = vrcp.f32 %v665_v21  ;;  %v692_v27 = vand.u32 2147483648, %v665_v21  ;;  %vm686_vm14 = vweird.f32 %v665_v21  ;;  %v690_v31 = vand.u32 2147483647, %v665_v21 }
 0x935   :  { %v669_v7 = vmul.f32 %v1734_v3, %v668_v5 }
 0x936   :  { %v693_v34 = vor.u32 1.1754944e-38, %v692_v27  ;;  %vm691_vm2 = vcmp.eq.f32.partialorder %v690_v31, 8.507059e+37  ;;  %v1605_v31 = vld [vmem:[%s2637_s7 + $0xb0] sm:$0xff] }
 0x937   :  { %v670_v9 = vadd.f32 %v1734_v3, %v669_v7 }
 0x939   :  { %v674_v11 = vsel %vm673_vm11, %v1734_v3, %v670_v9  ;;  %v1690_v9 = vld [vmem:[%s2639_s4 + $0x1] ss:$0 sm:$0xff] }
 0x93a   :  { %v679_v13 = vsel %vm676_vm12, %v678_v10, %v674_v11  ;;  %v1738_v22 = vpop.eup %1737 }
 0x93b   :  { %v712_v14 = vmul.f32 %v707_v12, %v679_v13  ;;  %v682_v23 = vmul.f32 %v1738_v22, %v665_v21  ;;  %vm687_vm13 = vweird.f32 %v1738_v22  ;;  %v1614_v12 = vld [vmem:[%s2637_s7 + $0xf8] sm:$0xff]  ;;  %v1613_v13 = vld [vmem:[%s2637_s7 + $0xf0] sm:$0xff] }
 0x93c   :  { %vm688_vm15 = vmor %vm686_vm14, %vm687_vm13  ;;  %878 = vmatpush.msrb.mxu0 %v1614_v12  ;;  %v1610_v21 = vld [vmem:[%s2637_s7 + $0xd8] sm:$0xff] }
 0x93d   :  { %v714_v15 = vadd.f32 %v712_v14, %v608_v47  ;;  %v683_v24 = vsub.f32 1.0, %v682_v23  ;;  %v1612_v14 = vld [vmem:[%s2637_s7 + $0xe8] sm:$0xff] }
 0x93e   :  { %879 = vmatpush.msrb.mxu0 %v1613_v13  ;;  %v1608_v23 = vld [vmem:[%s2637_s7 + $0xc8] sm:$0xff] }
 0x93f   :  { %1588 = vmatmul.msk.f32.vlgmr.msrb.gmra.mxu1 %vm171_vm1, %v714_v15  ;;  %v684_v25 = vmul.f32 %v1738_v22, %v683_v24  ;;  %v1607_v24 = vld [vmem:[%s2637_s7 + $0xc0] sm:$0xff] }
 0x940   :  { %880 = vmatpush.msrb.mxu0 %v1612_v14 }
 0x941   :  { %v685_v26 = vadd.f32 %v1738_v22, %v684_v25 }
 0x942   :  { %881 = vmatpush.msrb.mxu0 %v1611_v18 }
 0x943   :  { %v689_v33 = vsel %vm688_vm15, %v1738_v22, %v685_v26  ;;  %v1609_v22 = vld [vmem:[%s2637_s7 + $0xd0] sm:$0xff]  ;;  %v1606_v26 = vld [vmem:[%s2637_s7 + $0xb8] sm:$0xff] }
 0x944   :  { %v694_v35 = vsel %vm691_vm2, %v693_v34, %v689_v33  ;;  %882 = vmatpush.msrb.mxu0 %v1610_v21  ;;  %v1604_v34 = vld [vmem:[%s2637_s7 + $0xa8] sm:$0xff] }
 0x946   :  { %883 = vmatpush.msrb.mxu0 %v1609_v22 }
 0x948   :  { %884 = vmatpush.msrb.mxu0 %v1608_v23 }
 0x94a   :  { %885 = vmatpush.msrb.mxu0 %v1607_v24 }
 0x94c   :  { %886 = vmatpush.msrb.mxu0 %v1606_v26 }
 0x94e   :  { %887 = vmatpush.msrb.mxu0 %v1605_v31 }
 0x950   :  { %888 = vmatpush.msrb.mxu0 %v1604_v34 }
 0x976   :  { %v709_v36 = vpop.permute.xlu2 %708 }
 0x977   :  { %v713_v39 = vmul.f32 %v709_v36, %v694_v35  ;;  %v1603_v36 = vld [vmem:[%s2637_s7 + $0xa0] sm:$0xff] }
 0x978   :  { %889 = vmatpush.msrb.mxu0 %v1603_v36 }
 0x979   :  { %v715_v40 = vadd.f32 %v713_v39, %v606_v55 }
 0x97b   :  { %1589 = vmatmul.msk.f32.gmra.mxu1 %vm171_vm1, %v715_v40  ;;  %v1602_v40 = vld [vmem:[%s2637_s7 + $0x98] sm:$0xff] }
 0x97c   :  { %890 = vmatpush.msrb.mxu0 %v1602_v40 }
 0x9bc   :  { %v749_v42 = vpop.f32.mrf.mxu1 }
 0x9bd   :  { %v750_v43 = vadd.f32 %v1688_v17, %v749_v42 }
 0x9bf   :  { %v755_v44 = vadd.f32 %v750_v43, %v2194_v32 }
 0x9c1   :  { %v761_v20 = vsel %vm171_vm1, %v755_v44, 0.0 }
 0x9c2   :  { %762 = vadd.xlane.f32.xlu1 %v761_v20 }
 0x9f8   :  { %v752_v45 = vpop.f32.mrf.mxu1 }
 0x9f9   :  { %v753_v46 = vadd.f32 %v1688_v17, %v752_v45  ;;  %v1601_v45 = vld [vmem:[%s2637_s7 + $0x90] sm:$0xff] }
 0x9fa   :  { %891 = vmatpush.msrb.mxu0 %v1601_v45 }
 0x9fb   :  { %v756_v47 = vadd.f32 %v753_v46, %v2198_v38  ;;  %v1600_v46 = vld [vmem:[%s2637_s7 + $0x88] sm:$0xff] }
 0x9fc   :  { %892 = vmatpush.msrb.mxu0 %v1600_v46 }
 0x9fd   :  { %v764_v48 = vsel %vm171_vm1, %v756_v47, 0.0 }
 0x9fe   :  { %765 = vadd.xlane.f32.xlu0 %v764_v48  ;;  %v1691_v48 = vld [vmem:[%s2640_s6 + $0x1] ss:$0 sm:$0xff] }
 0xa35   :  { %v763_v49 = vpop.xlane.xlu1 %762 }
 0xa36   :  { %v767_v50 = vmul.f32 %v763_v49, %v2081_v41 }
 0xa38   :  { %v769_v51 = vsub.f32 %v755_v44, %v767_v50 }
 0xa3a   :  { %v771_v52 = vmul.f32 %v769_v51, %v769_v51 }
 0xa3c   :  { %v773_v53 = vsel %vm171_vm1, %v771_v52, 0.0 }
 0xa3d   :  { %774 = vadd.xlane.f32.xlu2 %v773_v53 }
 0xa71   :  { %v766_v54 = vpop.xlane.xlu0 %765 }
 0xa72   :  { %v768_v32 = vmul.f32 %v766_v54, %v2081_v41 }
 0xa74   :  { %v2243_v55 = vsub.f32 %v756_v47, %v768_v32  ;;  %v1599_v47 = vld [vmem:[%s2637_s7 + $0x80] sm:$0xff] }
 0xa75   :  { %893 = vmatpush.msrb.mxu0 %v1599_v47  ;;  %v1692_v32 = vld [vmem:[%s2641_s8 + $0x1] ss:$0 sm:$0xff] }
 0xa76   :  { %v772_v56 = vmul.f32 %v2243_v55, %v2243_v55 }
 0xa78   :  { %v776_v38 = vsel %vm171_vm1, %v772_v56, 0.0 }
 0xa79   :  { %777 = vadd.xlane.f32.xlu1 %v776_v38 }
 0xab0   :  { %v775_v61 = vpop.xlane.xlu2 %774 }
 0xab1   :  { %v779_v62 = vmul.f32 %v775_v61, %v2081_v41 }
 0xab3   :  { %v781_v63 = vadd.f32 1e-05, %v779_v62 }
 0xab5   :  { %1739 = vrsqrt.f32 %v781_v63  ;;  %vm789_vm4 = vweird.f32 %v781_v63 }
 0xabb   :  { %v1740_v0 = vpop.eup %1739 }
 0xabc   :  { %v784_v1 = vmul.f32 %v1740_v0, %v781_v63  ;;  %vm790_vm3 = vweird.f32 %v1740_v0 }
 0xabd   :  { %vm791_vm5 = vmor %vm789_vm4, %vm790_vm3 }
 0xabe   :  { %v785_v2 = vmul.f32 %v1740_v0, %v784_v1 }
 0xac0   :  { %v786_v3 = vmul.f32 0.5, %v785_v2 }
 0xac2   :  { %v787_v4 = vsub.f32 1.5, %v786_v3 }
 0xac4   :  { %v788_v5 = vmul.f32 %v1740_v0, %v787_v4 }
 0xac6   :  { %v792_v7 = vsel %vm791_vm5, %v1740_v0, %v788_v5 }
 0xac7   :  { %v803_v8 = vmul.f32 %v792_v7, %v769_v51 }
 0xac9   :  { %v808_v10 = vmul.f32 %v1689_v6, %v803_v8  ;;  %v1621_v8 = vld [vmem:[%s2631_s0 + $0x58] sm:$0xff] }
 0xaca   :  { %989 = vmatpush.msra.mxu1 %v1621_v8 }
 0xacb   :  { %v2267_v11 = vadd.f32 %v1690_v9, %v808_v10  ;;  %v1619_v10 = vld [vmem:[%s2631_s0 + $0x48] sm:$0xff] }
 0xacd   :  { %1597 = vmatmul.msk.f32.vlgmr.msrb.gmra.mxu3 %vm171_vm1, %v2267_v11 }
 0xaec   :  { %v778_v15 = vpop.xlane.xlu1 %777 }
 0xaed   :  { %v780_v16 = vmul.f32 %v778_v15, %v2081_v41 }
 0xaef   :  { %v782_v19 = vadd.f32 1e-05, %v780_v16 }
 0xaf1   :  { %1741 = vrsqrt.f32 %v782_v19  ;;  %vm799_vm7 = vweird.f32 %v782_v19 }
 0xaf7   :  { %v1742_v25 = vpop.eup %1741 }
 0xaf8   :  { %v794_v27 = vmul.f32 %v1742_v25, %v782_v19  ;;  %vm800_vm6 = vweird.f32 %v1742_v25 }
 0xaf9   :  { %vm801_vm8 = vmor %vm799_vm7, %vm800_vm6 }
 0xafa   :  { %v795_v33 = vmul.f32 %v1742_v25, %v794_v27 }
 0xafc   :  { %v796_v35 = vmul.f32 0.5, %v795_v33 }
 0xafe   :  { %v797_v39 = vsub.f32 1.5, %v796_v35 }
 0xb00   :  { %v798_v17 = vmul.f32 %v1742_v25, %v797_v39 }
 0xb02   :  { %v802_v42 = vsel %vm801_vm8, %v1742_v25, %v798_v17 }
 0xb03   :  { %v804_v43 = vmul.f32 %v802_v42, %v2243_v55 }
 0xb05   :  { %v809_v44 = vmul.f32 %v1689_v6, %v804_v43 }
 0xb07   :  { %v814_v20 = vadd.f32 %v1690_v9, %v809_v44  ;;  %v1620_v9 = vld [vmem:[%s2631_s0 + $0x50] sm:$0xff]  ;;  %v1695_v44 = vld [vmem:[%s2633_s30 + $0x2] ss:$0 sm:$0xff] }
 0xb08   :  { %990 = vmatpush.msra.mxu1 %v1620_v9 }
 0xb09   :  { %1598 = vmatmul.msk.f32.gmra.mxu3 %vm171_vm1, %v814_v20 }
 0xb0a   :  { %991 = vmatpush.msra.mxu1 %v1619_v10 }
 0xb50   :  { %v848_v49 = vpop.f32.mrf.mxu3 }
 0xb51   :  { %v849_v50 = vadd.f32 %v1691_v48, %v848_v49 }
 0xb53   :  { %v854_v51 = vmax.f32 %v849_v50, 0.0 }
 0xb55   :  { %894 = vmatmul.f32.vlgmr.msrb.gmra.mxu0 %v854_v51 }
 0xb8c   :  { %v851_v52 = vpop.f32.mrf.mxu3 }
 0xb8d   :  { %v852_v53 = vadd.f32 %v1691_v48, %v851_v52 }
 0xb8f   :  { %v855_v54 = vmax.f32 %v852_v53, 0.0 }
 0xb91   :  { %897 = vmatmul.f32.gmra.mxu0 %v855_v54 }
 0xbd2   :  { %v895_v55 = vpop.f32.mrf.mxu0 }
 0xbd3   :  { %v896_v56 = vadd.f32 %v1692_v32, %v895_v55 }
 0xbd5   :  { %v901_v38 = vadd.f32 %v896_v56, %v2267_v11  ;;  %v1618_v11 = vld [vmem:[%s2631_s0 + $0x40] sm:$0xff] }
 0xbd6   :  { %992 = vmatpush.msra.mxu1 %v1618_v11 }
 0xbd7   :  { %v907_v57 = vsel %vm171_vm1, %v901_v38, 0.0 }
 0xbd8   :  { %908 = vadd.xlane.f32.xlu0 %v907_v57  ;;  %1048 = vmatpush.msrb.mxu1 %v2023_v28  ;;  %v1693_v28 = vld [vmem:[%s2580_s13 + $0x1] ss:$0 sm:$0xff] }
 0xbda   :  { %1049 = vmatpush.msrb.mxu1 %v2028_v29 }
 0xbdc   :  { %1050 = vmatpush.msrb.mxu1 %v2034_v30  ;;  %v1694_v30 = vld [vmem:[%s2581_s14 + $0x1] ss:$0 sm:$0xff] }
 0xbde   :  { %1051 = vmatpush.msrb.mxu1 %v2048_v37 }
 0xc0e   :  { %v898_v58 = vpop.f32.mrf.mxu0 }
 0xc0f   :  { %v899_v59 = vadd.f32 %v1692_v32, %v898_v58 }
 0xc11   :  { %v902_v60 = vadd.f32 %v899_v59, %v814_v20 }
 0xc13   :  { %v910_v61 = vsel %vm171_vm1, %v902_v60, 0.0 }
 0xc14   :  { %911 = vadd.xlane.f32.xlu2 %v910_v61 }
 0xc4b   :  { %v909_v62 = vpop.xlane.xlu0 %908 }
 0xc4c   :  { %v913_v63 = vmul.f32 %v909_v62, %v2081_v41  ;;  %v1632_v62 = vld [vmem:[%s2634_s26 + $0x58] sm:$0xff] }
 0xc4d   :  { %1145 = vmatpush.msra.mxu3 %v1632_v62 }
 0xc4e   :  { %v915_v0 = vsub.f32 %v901_v38, %v913_v63  ;;  %v1631_v63 = vld [vmem:[%s2634_s26 + $0x50] sm:$0xff] }
 0xc4f   :  { %1146 = vmatpush.msra.mxu3 %v1631_v63 }
 0xc50   :  { %v917_v1 = vmul.f32 %v915_v0, %v915_v0 }
 0xc52   :  { %v919_v2 = vsel %vm171_vm1, %v917_v1, 0.0  ;;  %v1629_v1 = vld [vmem:[%s2634_s26 + $0x40] sm:$0xff] }
 0xc53   :  { %920 = vadd.xlane.f32.xlu1 %v919_v2 }
 0xc87   :  { %v912_v3 = vpop.xlane.xlu2 %911 }
 0xc88   :  { %v914_v4 = vmul.f32 %v912_v3, %v2081_v41 }
 0xc8a   :  { %v916_v5 = vsub.f32 %v902_v60, %v914_v4 }
 0xc8c   :  { %v918_v6 = vmul.f32 %v916_v5, %v916_v5 }
 0xc8e   :  { %v922_v7 = vsel %vm171_vm1, %v918_v6, 0.0 }
 0xc8f   :  { %923 = vadd.xlane.f32.xlu0 %v922_v7 }
 0xcc6   :  { %v921_v12 = vpop.xlane.xlu1 %920 }
 0xcc7   :  { %v925_v13 = vmul.f32 %v921_v12, %v2081_v41 }
 0xcc9   :  { %v927_v14 = vadd.f32 1e-05, %v925_v13 }
 0xccb   :  { %1743 = vrsqrt.f32 %v927_v14  ;;  %vm935_vm10 = vweird.f32 %v927_v14 }
 0xcd1   :  { %v1744_v15 = vpop.eup %1743 }
 0xcd2   :  { %v930_v16 = vmul.f32 %v1744_v15, %v927_v14  ;;  %vm936_vm9 = vweird.f32 %v1744_v15 }
 0xcd3   :  { %vm937_vm11 = vmor %vm935_vm10, %vm936_vm9 }
 0xcd4   :  { %v931_v18 = vmul.f32 %v1744_v15, %v930_v16 }
 0xcd6   :  { %v932_v19 = vmul.f32 0.5, %v931_v18 }
 0xcd8   :  { %v933_v21 = vsub.f32 1.5, %v932_v19 }
 0xcda   :  { %v934_v22 = vmul.f32 %v1744_v15, %v933_v21 }
 0xcdc   :  { %v938_v29 = vsel %vm937_vm11, %v1744_v15, %v934_v22 }
 0xcdd   :  { %v949_v23 = vmul.f32 %v938_v29, %v915_v0  ;;  %v1630_v0 = vld [vmem:[%s2634_s26 + $0x48] sm:$0xff] }
 0xcde   :  { %1147 = vmatpush.msra.mxu3 %v1630_v0 }
 0xcdf   :  { %v954_v37 = vmul.f32 %v1693_v28, %v949_v23 }
 0xce0   :  { %1148 = vmatpush.msra.mxu3 %v1629_v1 }
 0xce1   :  { %v2358_v24 = vadd.f32 %v1694_v30, %v954_v37 }
 0xce3   :  { %1623 = vmatmul.msk.f32.vlgmr.msra.gmra.mxu1 %vm171_vm1, %v2358_v24 }
 0xd02   :  { %v924_v25 = vpop.xlane.xlu0 %923 }
 0xd03   :  { %v926_v26 = vmul.f32 %v924_v25, %v2081_v41 }
 0xd05   :  { %v928_v27 = vadd.f32 1e-05, %v926_v26 }
 0xd07   :  { %1745 = vrsqrt.f32 %v928_v27  ;;  %vm945_vm13 = vweird.f32 %v928_v27 }
 0xd0d   :  { %v1746_v31 = vpop.eup %1745 }
 0xd0e   :  { %v940_v33 = vmul.f32 %v1746_v31, %v928_v27  ;;  %vm946_vm12 = vweird.f32 %v1746_v31 }
 0xd0f   :  { %vm947_vm14 = vmor %vm945_vm13, %vm946_vm12 }
 0xd10   :  { %v941_v34 = vmul.f32 %v1746_v31, %v940_v33 }
 0xd12   :  { %v942_v35 = vmul.f32 0.5, %v941_v34 }
 0xd14   :  { %v943_v36 = vsub.f32 1.5, %v942_v35 }
 0xd16   :  { %v944_v39 = vmul.f32 %v1746_v31, %v943_v36 }
 0xd18   :  { %v948_v40 = vsel %vm947_vm14, %v1746_v31, %v944_v39 }
 0xd19   :  { %v950_v17 = vmul.f32 %v948_v40, %v916_v5 }
 0xd1b   :  { %v955_v42 = vmul.f32 %v1693_v28, %v950_v17  ;;  %v1696_v17 = vld [vmem:[%s2635_s20 + $0x2] ss:$0 sm:$0xff]  ;;  %s1803_s20 = smov 127  }
 0xd1d   :  { %v2363_v43 = vadd.f32 %v1694_v30, %v955_v42 }
 0xd1f   :  { %1624 = vmatmul.msk.f32.gmra.mxu1 %vm171_vm1, %v2363_v43 }
 0xd60   :  { %v994_v20 = vpop.f32.mrf.mxu1 }
 0xd61   :  { %v995_v45 = vadd.f32 %v1695_v44, %v994_v20 }
 0xd63   :  { %1002 = vrot.lane.b32.xlu1 %v995_v45, %s2644_s12 }
 0xd9c   :  { %v997_v46 = vpop.f32.mrf.mxu1 }
 0xd9d   :  { %v998_v47 = vadd.f32 %v1695_v44, %v997_v46 }
 0xd9f   :  { %1004 = vrot.lane.b32.xlu2 %v998_v47, %s2644_s12 }
 0xdd5   :  { %v1003_v48 = vpop.permute.xlu1 %1002 }
 0xdd6   :  { %1014 = vrot.lane.b32.xlu2 %v1003_v48, %s2642_s24 }
 0xdde   :  { %1008 = vrot.lane.b32.xlu2 %v998_v47, %s2643_s1 }
 0xdf9   :  { %v1005_v49 = vpop.permute.xlu2 %1004 }
 0xdfa   :  { %1012 = vrot.lane.b32.xlu0 %v1005_v49, %s2642_s24 }
 0xe30   :  { %v1015_v50 = vpop.permute.xlu2 %1014 }
 0xe31   :  { %v1019_v51 = vsub.f32 %v998_v47, %v1015_v50 }
 0xe33   :  { %1024 = vrot.lane.b32.xlu1 %v1019_v51, %s2644_s12 }
 0xe38   :  { %v1009_v52 = vpop.permute.xlu2 %1008 }
 0xe3b   :  { %1097 = vrot.lane.b32.xlu1 %v1009_v52, %s2643_s1 }
 0xe6c   :  { %v1013_v53 = vpop.permute.xlu0 %1012 }
 0xe6d   :  { %v1018_v54 = vsub.f32 %v995_v45, %v1013_v53 }
 0xe6f   :  { %1022 = vrot.lane.b32.xlu0 %v1018_v54, %s2644_s12 }
 0xe77   :  { %1006 = vrot.lane.b32.xlu0 %v995_v45, %s2643_s1 }
 0xea5   :  { %v1025_v32 = vpop.permute.xlu1 %1024 }
 0xea6   :  { %v1029_v59 = vmul.f32 %v1025_v32, %v998_v47 }
 0xead   :  { %v1098_v55 = vpop.permute.xlu1 %1097 }
 0xeae   :  { %v1103_v56 = vsub.f32 %v995_v45, %v1098_v55 }
 0xeb0   :  { %1107 = vrot.lane.b32.xlu0 %v1103_v56, %s2643_s1 }
 0xee1   :  { %v1023_v38 = vpop.permute.xlu0 %1022 }
 0xee2   :  { %v1028_v57 = vmul.f32 %v1023_v38, %v995_v45  ;;  %v1641_v38 = vld [vmem:[%s2636_s27 + $0x58] sm:$0xff] }
 0xee3   :  { %1244 = vmatpush.msra.mxu1 %v1641_v38 }
 0xee4   :  { %1625 = vmatmul.msk.f32.vlgmr.msrb.gmra.mxu1 %vm171_vm1, %v1028_v57  ;;  %v1640_v57 = vld [vmem:[%s2636_s27 + $0x50] sm:$0xff] }
 0xee5   :  { %1245 = vmatpush.msra.mxu1 %v1640_v57 }
 0xee9   :  { %v1007_v58 = vpop.permute.xlu0 %1006 }
 0xeea   :  { %1099 = vrot.lane.b32.xlu2 %v1007_v58, %s2643_s1 }
 0xeec   :  { %1626 = vmatmul.msk.f32.gmra.mxu1 %vm171_vm1, %v1029_v59  ;;  %v1638_v59 = vld [vmem:[%s2636_s27 + $0x40] sm:$0xff] }
 0xf22   :  { %v1108_v15 = vpop.permute.xlu0 %1107 }
 0xf44   :  { %v1100_v60 = vpop.permute.xlu2 %1099 }
 0xf45   :  { %v1104_v61 = vsub.f32 %v998_v47, %v1100_v60 }
 0xf47   :  { %1109 = vrot.lane.b32.xlu1 %v1104_v61, %s2643_s1 }
 0xf61   :  { %v1053_v2 = vpop.f32.mrf.mxu1 }
 0xf62   :  { %v1627_v3 = vmul.f32 -1.442695, %v1053_v2 }
 0xf64   :  { %1747 = vpow2.f32 %v1627_v3 }
 0xf69   :  { %v1056_v21 = vpop.f32.mrf.mxu1 }
 0xf6a   :  { %v1748_v4 = vpop.eup %1747  ;;  %v1628_v22 = vmul.f32 -1.442695, %v1056_v21  ;;  %v1655_v21 = vld [vmem:[%s2637_s7 + $0x150] sm:$0xff] }
 0xf6b   :  { %v1065_v5 = vadd.f32 1.0, %v1748_v4 }
 0xf6d   :  { %1749 = vrcp.f32 %v1065_v5  ;;  %v1078_v9 = vand.u32 2147483648, %v1065_v5  ;;  %v1076_v11 = vand.u32 2147483647, %v1065_v5  ;;  %vm1072_vm2 = vweird.f32 %v1065_v5 }
 0xf6e   :  { %1751 = vpow2.f32 %v1628_v22  ;;  %v1654_v22 = vld [vmem:[%s2637_s7 + $0x148] sm:$0xff] }
 0xf6f   :  { %v1079_v13 = vor.u32 1.1754944e-38, %v1078_v9  ;;  %vm1077_vm4 = vcmp.eq.f32.partialorder %v1076_v11, 8.507059e+37  ;;  %v1660_v11 = vld [vmem:[%s2637_s7 + $0x178] sm:$0xff] }
 0xf70   :  { %1279 = vmatpush.msra.mxu2 %v1660_v11 }
 0xf73   :  { %v1750_v6 = vpop.eup %1749 }
 0xf74   :  { %v1068_v7 = vmul.f32 %v1750_v6, %v1065_v5  ;;  %vm1073_vm15 = vweird.f32 %v1750_v6  ;;  %v1752_v28 = vpop.eup %1751  ;;  %v1697_v5 = vld [vmem:[%s2638_s2 + $0x2] ss:$0 sm:$0xff] }
 0xf75   :  { %vm1074_vm3 = vmor %vm1072_vm2, %vm1073_vm15  ;;  %v1066_v29 = vadd.f32 1.0, %v1752_v28  ;;  %v1653_v28 = vld [vmem:[%s2637_s7 + $0x140] sm:$0xff] }
 0xf76   :  { %v1069_v8 = vsub.f32 1.0, %v1068_v7 }
 0xf77   :  { %1753 = vrcp.f32 %v1066_v29  ;;  %v1093_v27 = vand.u32 2147483648, %v1066_v29  ;;  %vm1087_vm6 = vweird.f32 %v1066_v29  ;;  %v1091_v31 = vand.u32 2147483647, %v1066_v29 }
 0xf78   :  { %v1070_v10 = vmul.f32 %v1750_v6, %v1069_v8  ;;  %v1698_v8 = vld [vmem:[%s2639_s4 + $0x2] ss:$0 sm:$0xff] }
 0xf79   :  { %v1094_v34 = vor.u32 1.1754944e-38, %v1093_v27  ;;  %vm1092_vm8 = vcmp.eq.f32.partialorder %v1091_v31, 8.507059e+37  ;;  %v1649_v31 = vld [vmem:[%s2637_s7 + $0x120] sm:$0xff] }
 0xf7a   :  { %v1071_v12 = vadd.f32 %v1750_v6, %v1070_v10 }
 0xf7c   :  { %v1075_v14 = vsel %vm1074_vm3, %v1750_v6, %v1071_v12  ;;  %v1659_v12 = vld [vmem:[%s2637_s7 + $0x170] sm:$0xff] }
 0xf7d   :  { %v1080_v16 = vsel %vm1077_vm4, %v1079_v13, %v1075_v14  ;;  %v1754_v23 = vpop.eup %1753  ;;  %v1658_v13 = vld [vmem:[%s2637_s7 + $0x168] sm:$0xff]  ;;  %1280 = vmatpush.msra.mxu2 %v1659_v12  ;;  %v1701_v12 = vld [vmem:[%s2580_s13 + $0x2] ss:$0 sm:$0xff] }
 0xf7e   :  { %v1113_v18 = vmul.f32 %v1108_v15, %v1080_v16  ;;  %v1083_v30 = vmul.f32 %v1754_v23, %v1066_v29  ;;  %vm1088_vm5 = vweird.f32 %v1754_v23  ;;  %v1657_v16 = vld [vmem:[%s2637_s7 + $0x160] sm:$0xff] }
 0xf7f   :  { %vm1089_vm7 = vmor %vm1087_vm6, %vm1088_vm5  ;;  %1281 = vmatpush.msra.mxu2 %v1658_v13 }
 0xf80   :  { %v1115_v19 = vadd.f32 %v1113_v18, %v1009_v52  ;;  %v1084_v37 = vsub.f32 1.0, %v1083_v30 }
 0xf81   :  { %1282 = vmatpush.msra.mxu2 %v1657_v16 }
 0xf82   :  { %1634 = vmatmul.msk.f32.vlgmr.msra.gmra.mxu3 %vm171_vm1, %v1115_v19  ;;  %v1085_v25 = vmul.f32 %v1754_v23, %v1084_v37  ;;  %v1656_v19 = vld [vmem:[%s2637_s7 + $0x158] sm:$0xff]  ;;  %v1651_v37 = vld [vmem:[%s2637_s7 + $0x130] sm:$0xff] }
 0xf83   :  { %1283 = vmatpush.msra.mxu2 %v1656_v19 }
 0xf84   :  { %v1086_v26 = vadd.f32 %v1754_v23, %v1085_v25 }
 0xf85   :  { %1284 = vmatpush.msra.mxu2 %v1655_v21 }
 0xf86   :  { %v1090_v33 = vsel %vm1089_vm7, %v1754_v23, %v1086_v26  ;;  %v1652_v23 = vld [vmem:[%s2637_s7 + $0x138] sm:$0xff]  ;;  %v1650_v26 = vld [vmem:[%s2637_s7 + $0x128] sm:$0xff] }
 0xf87   :  { %v1095_v35 = vsel %vm1092_vm8, %v1094_v34, %v1090_v33  ;;  %1285 = vmatpush.msra.mxu2 %v1654_v22  ;;  %v1648_v34 = vld [vmem:[%s2637_s7 + $0x118] sm:$0xff] }
 0xf89   :  { %1286 = vmatpush.msra.mxu2 %v1653_v28 }
 0xf8b   :  { %1287 = vmatpush.msra.mxu2 %v1652_v23 }
 0xf8d   :  { %1288 = vmatpush.msra.mxu2 %v1651_v37 }
 0xf8f   :  { %1289 = vmatpush.msra.mxu2 %v1650_v26 }
 0xf91   :  { %1290 = vmatpush.msra.mxu2 %v1649_v31 }
 0xf93   :  { %1291 = vmatpush.msra.mxu2 %v1648_v34 }
 0xfb9   :  { %v1110_v36 = vpop.permute.xlu1 %1109 }
 0xfba   :  { %v1114_v39 = vmul.f32 %v1110_v36, %v1095_v35 }
 0xfbc   :  { %v1116_v40 = vadd.f32 %v1114_v39, %v1007_v58  ;;  %v1639_v58 = vld [vmem:[%s2636_s27 + $0x48] sm:$0xff] }
 0xfbd   :  { %1246 = vmatpush.msra.mxu1 %v1639_v58 }
 0xfbe   :  { %1635 = vmatmul.msk.f32.gmra.mxu3 %vm171_vm1, %v1116_v40 }
 0xfbf   :  { %1247 = vmatpush.msra.mxu1 %v1638_v59 }
0x1005   :  { %v1150_v42 = vpop.f32.mrf.mxu3 }
0x1006   :  { %v1151_v44 = vadd.f32 %v1696_v17, %v1150_v42  ;;  %v1647_v42 = vld [vmem:[%s2637_s7 + $0x110] sm:$0xff] }
0x1007   :  { %1292 = vmatpush.msra.mxu2 %v1647_v42 }
0x1008   :  { %v1156_v20 = vadd.f32 %v1151_v44, %v2358_v24  ;;  %v1646_v44 = vld [vmem:[%s2637_s7 + $0x108] sm:$0xff] }
0x1009   :  { %1293 = vmatpush.msra.mxu2 %v1646_v44 }
0x100a   :  { %v1162_v45 = vsel %vm171_vm1, %v1156_v20, 0.0 }
0x100b   :  { %1163 = vadd.xlane.f32.xlu2 %v1162_v45  ;;  %v1699_v45 = vld [vmem:[%s2640_s6 + $0x2] ss:$0 sm:$0xff] }
0x1041   :  { %v1153_v46 = vpop.f32.mrf.mxu3 }
0x1042   :  { %v1154_v47 = vadd.f32 %v1696_v17, %v1153_v46 }
0x1044   :  { %v1157_v48 = vadd.f32 %v1154_v47, %v2363_v43 }
0x1046   :  { %v1165_v49 = vsel %vm171_vm1, %v1157_v48, 0.0 }
0x1047   :  { %1166 = vadd.xlane.f32.xlu0 %v1165_v49 }
0x107e   :  { %v1164_v50 = vpop.xlane.xlu2 %1163 }
0x107f   :  { %v1168_v51 = vmul.f32 %v1164_v50, %v2081_v41 }
0x1081   :  { %v1170_v52 = vsub.f32 %v1156_v20, %v1168_v51  ;;  %v1645_v20 = vld [vmem:[%s2637_s7 + $0x100] sm:$0xff] }
0x1082   :  { %1294 = vmatpush.msra.mxu2 %v1645_v20 }
0x1083   :  { %v1172_v53 = vmul.f32 %v1170_v52, %v1170_v52 }
0x1085   :  { %v1174_v54 = vsel %vm171_vm1, %v1172_v53, 0.0 }
0x1086   :  { %1175 = vadd.xlane.f32.xlu1 %v1174_v54 }
0x10ba   :  { %v1167_v32 = vpop.xlane.xlu0 %1166 }
0x10bb   :  { %v1169_v24 = vmul.f32 %v1167_v32, %v2081_v41 }
0x10bd   :  { %v2408_v55 = vsub.f32 %v1157_v48, %v1169_v24 }
0x10bf   :  { %v1173_v56 = vmul.f32 %v2408_v55, %v2408_v55 }
0x10c1   :  { %v1177_v43 = vsel %vm171_vm1, %v1173_v56, 0.0 }
0x10c2   :  { %1178 = vadd.xlane.f32.xlu2 %v1177_v43 }
0x10f9   :  { %v1176_v60 = vpop.xlane.xlu1 %1175 }
0x10fa   :  { %v1180_v61 = vmul.f32 %v1176_v60, %v2081_v41 }
0x10fc   :  { %v1182_v62 = vadd.f32 1e-05, %v1180_v61 }
0x10fe   :  { %1755 = vrsqrt.f32 %v1182_v62  ;;  %vm1190_vm10 = vweird.f32 %v1182_v62 }
0x1104   :  { %v1756_v63 = vpop.eup %1755 }
0x1105   :  { %v1185_v0 = vmul.f32 %v1756_v63, %v1182_v62  ;;  %vm1191_vm9 = vweird.f32 %v1756_v63 }
0x1106   :  { %vm1192_vm11 = vmor %vm1190_vm10, %vm1191_vm9 }
0x1107   :  { %v1186_v1 = vmul.f32 %v1756_v63, %v1185_v0 }
0x1109   :  { %v1187_v2 = vmul.f32 0.5, %v1186_v1 }
0x110b   :  { %v1188_v3 = vsub.f32 1.5, %v1187_v2 }
0x110d   :  { %v1189_v4 = vmul.f32 %v1756_v63, %v1188_v3 }
0x110f   :  { %v1193_v6 = vsel %vm1192_vm11, %v1756_v63, %v1189_v4 }
0x1110   :  { %v1204_v7 = vmul.f32 %v1193_v6, %v1170_v52  ;;  %v1700_v52 = vld [vmem:[%s2641_s8 + $0x2] ss:$0 sm:$0xff] }
0x1112   :  { %v1209_v9 = vmul.f32 %v1697_v5, %v1204_v7 }
0x1114   :  { %v2432_v10 = vadd.f32 %v1698_v8, %v1209_v9 }
0x1116   :  { %1643 = vmatmul.msk.f32.vlgmr.msra.gmra.mxu1 %vm171_vm1, %v2432_v10 }
0x1135   :  { %v1179_v14 = vpop.xlane.xlu2 %1178 }
0x1136   :  { %v1181_v15 = vmul.f32 %v1179_v14, %v2081_v41 }
0x1138   :  { %v1183_v18 = vadd.f32 1e-05, %v1181_v15  ;;  %v1702_v15 = vld [vmem:[%s2581_s14 + $0x2] ss:$0 sm:$0xff] }
0x113a   :  { %1757 = vrsqrt.f32 %v1183_v18  ;;  %vm1200_vm13 = vweird.f32 %v1183_v18 }
0x1140   :  { %v1758_v29 = vpop.eup %1757 }
0x1141   :  { %v1195_v30 = vmul.f32 %v1758_v29, %v1183_v18  ;;  %vm1201_vm12 = vweird.f32 %v1758_v29  ;;  %v1703_v18 = vld [vmem:[%s2582_s15] ss:$0 sm:$0xff] }
0x1142   :  { %vm1202_vm14 = vmor %vm1200_vm13, %vm1201_vm12 }
0x1143   :  { %v1196_v25 = vmul.f32 %v1758_v29, %v1195_v30 }
0x1145   :  { %v1197_v27 = vmul.f32 0.5, %v1196_v25 }
0x1147   :  { %v1198_v33 = vsub.f32 1.5, %v1197_v27 }
0x1149   :  { %v1199_v35 = vmul.f32 %v1758_v29, %v1198_v33 }
0x114b   :  { %v1203_v36 = vsel %vm1202_vm14, %v1758_v29, %v1199_v35 }
0x114c   :  { %v1205_v39 = vmul.f32 %v1203_v36, %v2408_v55 }
0x114e   :  { %v1210_v40 = vmul.f32 %v1697_v5, %v1205_v39 }
0x1150   :  { %v1215_v17 = vadd.f32 %v1698_v8, %v1210_v40  ;;  %v1802_v40 = vmov 0  }
0x1151   :  { %1675 = vset.pattern.permute.xlu0 %v1802_v40  ;;  %1676 = vset.pattern.permute.xlu1 %v1802_v40  ;;  %v1711_v40 = vld [vmem:[#allocation3] ss:$0 sm:$0xff] }
0x1152   :  { %1644 = vmatmul.msk.f32.gmra.mxu1 %vm171_vm1, %v1215_v17 }
0x1193   :  { %v1249_v46 = vpop.f32.mrf.mxu1 }
0x1194   :  { %v1250_v47 = vadd.f32 %v1699_v45, %v1249_v46 }
0x1196   :  { %v1255_v48 = vmax.f32 %v1250_v47, 0.0 }
0x1198   :  { %1295 = vmatmul.f32.vlgmr.msra.gmra.mxu2 %v1255_v48 }
0x11cf   :  { %v1252_v49 = vpop.f32.mrf.mxu1 }
0x11d0   :  { %v1253_v50 = vadd.f32 %v1699_v45, %v1252_v49 }
0x11d2   :  { %v1256_v51 = vmax.f32 %v1253_v50, 0.0 }
0x11d4   :  { %1298 = vmatmul.f32.gmra.mxu2 %v1256_v51 }
0x121b   :  { %v1296_v53 = vpop.f32.mrf.mxu2 }
0x121c   :  { %v1297_v54 = vadd.f32 %v1700_v52, %v1296_v53 }
0x121e   :  { %v1302_v32 = vadd.f32 %v1297_v54, %v2432_v10 }
0x1220   :  { %v1308_v24 = vsel %vm171_vm1, %v1302_v32, 0.0 }
0x1221   :  { %1309 = vadd.xlane.f32.xlu0 %v1308_v24 }
0x1257   :  { %v1299_v55 = vpop.f32.mrf.mxu2 }
0x1258   :  { %v1300_v56 = vadd.f32 %v1700_v52, %v1299_v55 }
0x125a   :  { %v1303_v43 = vadd.f32 %v1300_v56, %v1215_v17  ;;  %v1704_v17 = vld [vmem:[#allocation2] ss:$0 sm:$0xff] }
0x125c   :  { %v1311_v38 = vsel %vm171_vm1, %v1303_v43, 0.0 }
0x125d   :  { %1312 = vadd.xlane.f32.xlu1 %v1311_v38 }
0x1294   :  { %v1310_v57 = vpop.xlane.xlu0 %1309 }
0x1295   :  { %v1314_v58 = vmul.f32 %v1310_v57, %v2081_v41 }
0x1297   :  { %v1316_v59 = vsub.f32 %v1302_v32, %v1314_v58 }
0x1299   :  { %v1318_v60 = vmul.f32 %v1316_v59, %v1316_v59 }
0x129b   :  { %v1320_v61 = vsel %vm171_vm1, %v1318_v60, 0.0 }
0x129c   :  { %1321 = vadd.xlane.f32.xlu2 %v1320_v61 }
0x12d0   :  { %v1313_v62 = vpop.xlane.xlu1 %1312 }
0x12d1   :  { %v1315_v63 = vmul.f32 %v1313_v62, %v2081_v41 }
0x12d3   :  { %v1317_v0 = vsub.f32 %v1303_v43, %v1315_v63 }
0x12d5   :  { %v1319_v1 = vmul.f32 %v1317_v0, %v1317_v0 }
0x12d7   :  { %v1323_v2 = vsel %vm171_vm1, %v1319_v1, 0.0 }
0x12d8   :  { %1324 = vadd.xlane.f32.xlu0 %v1323_v2 }
0x130f   :  { %v1322_v3 = vpop.xlane.xlu2 %1321 }
0x1310   :  { %v1326_v4 = vmul.f32 %v1322_v3, %v2081_v41 }
0x1312   :  { %v1328_v5 = vadd.f32 1e-05, %v1326_v4 }
0x1314   :  { %1759 = vrsqrt.f32 %v1328_v5  ;;  %vm1336_vm2 = vweird.f32 %v1328_v5 }
0x131a   :  { %v1760_v6 = vpop.eup %1759 }
0x131b   :  { %v1331_v7 = vmul.f32 %v1760_v6, %v1328_v5  ;;  %vm1337_vm15 = vweird.f32 %v1760_v6 }
0x131c   :  { %vm1338_vm3 = vmor %vm1336_vm2, %vm1337_vm15 }
0x131d   :  { %v1332_v8 = vmul.f32 %v1760_v6, %v1331_v7  ;;  %v1436_v7 = vld [vmem:[%s2584_s17 + $0x18] sm:$0xff] }
0x131e   :  { %1456 = vmatpush.msrb.mxu3 %v1436_v7 }
0x131f   :  { %v1333_v9 = vmul.f32 0.5, %v1332_v8  ;;  %v1435_v8 = vld [vmem:[%s2584_s17 + $0x10] sm:$0xff] }
0x1320   :  { %1457 = vmatpush.msrb.mxu3 %v1435_v8 }
0x1321   :  { %v1334_v10 = vsub.f32 1.5, %v1333_v9  ;;  %v1479_v9 = vld [vmem:[%s2587_s21 + $0x8] sm:$0xff] }
0x1323   :  { %v1335_v11 = vmul.f32 %v1760_v6, %v1334_v10  ;;  %v1434_v10 = vld [vmem:[%s2584_s17 + $0x8] sm:$0xff] }
0x1324   :  { %1458 = vmatpush.msrb.mxu3 %v1434_v10 }
0x1325   :  { %v1339_v13 = vsel %vm1338_vm3, %v1760_v6, %v1335_v11  ;;  %v1480_v6 = vld [vmem:[%s2587_s21 + $0x10] sm:$0xff]  ;;  %v1478_v11 = vld [vmem:[%s2587_s21] sm:$0xff] }
0x1326   :  { %v1350_v14 = vmul.f32 %v1339_v13, %v1316_v59  ;;  %1498 = vmatpush.msra.mxu0 %v1480_v6  ;;  %v1433_v13 = vld [vmem:[%s2584_s17] sm:$0xff] }
0x1327   :  { %1459 = vmatpush.msrb.mxu3 %v1433_v13 }
0x1328   :  { %v1355_v16 = vmul.f32 %v1701_v12, %v1350_v14  ;;  %1499 = vmatpush.msra.mxu0 %v1479_v9 }
0x132a   :  { %v2510_v19 = vadd.f32 %v1702_v15, %v1355_v16  ;;  %1500 = vmatpush.msra.mxu0 %v1478_v11 }
0x132c   :  { %v1366_v21 = vmul.f32 %v1703_v18, %v2510_v19 }
0x132e   :  { %v1368_v22 = vsel %vm171_vm1, %v1366_v21, 0.0 }
0x132f   :  { %1369 = vadd.xlane.f32.xlu1 %v1368_v22  ;;  %v1705_v22 = vld [vmem:[%s2588_s22] ss:$0 sm:$0xff] }
0x134b   :  { %v1325_v28 = vpop.xlane.xlu0 %1324 }
0x134c   :  { %v1327_v29 = vmul.f32 %v1325_v28, %v2081_v41 }
0x134e   :  { %v1329_v23 = vadd.f32 1e-05, %v1327_v29 }
0x1350   :  { %1761 = vrsqrt.f32 %v1329_v23  ;;  %vm1346_vm5 = vweird.f32 %v1329_v23 }
0x1356   :  { %v1762_v30 = vpop.eup %1761 }
0x1357   :  { %v1341_v37 = vmul.f32 %v1762_v30, %v1329_v23  ;;  %vm1347_vm4 = vweird.f32 %v1762_v30  ;;  %v1706_v23 = vld [vmem:[%s2589_s23] ss:$0 sm:$0xff] }
0x1358   :  { %vm1348_vm6 = vmor %vm1346_vm5, %vm1347_vm4 }
0x1359   :  { %v1342_v25 = vmul.f32 %v1762_v30, %v1341_v37 }
0x135b   :  { %v1343_v26 = vmul.f32 0.5, %v1342_v25 }
0x135d   :  { %v1344_v27 = vsub.f32 1.5, %v1343_v26 }
0x135f   :  { %v1345_v31 = vmul.f32 %v1762_v30, %v1344_v27 }
0x1361   :  { %v1349_v33 = vsel %vm1348_vm6, %v1762_v30, %v1345_v31  ;;  %v1708_v31 = vld [vmem:[%s2586_s19] ss:$0 sm:$0xff] }
0x1362   :  { %v1351_v34 = vmul.f32 %v1349_v33, %v1317_v0 }
0x1364   :  { %v1356_v35 = vmul.f32 %v1701_v12, %v1351_v34  ;;  %v1771_v12 = vld [vmem:[%s2630_s9] sm:$0xff] }
0x1365   :  { %1667 = vmatmul.msk.f32.vlgmr.msra.gmra.mxu0 %vm106_vm0, %v1771_v12 }
0x1366   :  { %v2515_v36 = vadd.f32 %v1702_v15, %v1356_v35 }
0x1368   :  { %v1367_v39 = vmul.f32 %v1703_v18, %v2515_v36 }
0x136a   :  { %v1371_v41 = vsel %vm171_vm1, %v1367_v39, 0.0 }
0x136b   :  { %1372 = vadd.xlane.f32.xlu2 %v1371_v41 }
0x13a2   :  { %v1370_v42 = vpop.xlane.xlu1 %1369 }
0x13a3   :  { %v1378_v44 = vadd.f32 %v1704_v17, %v1370_v42 }
0x13a5   :  { %v1664_v20 = vmul.f32 -1.442695, %v1378_v44 }
0x13a7   :  { %1763 = vpow2.f32 %v1664_v20 }
0x13ad   :  { %v1764_v45 = vpop.eup %1763 }
0x13ae   :  { %v1386_v46 = vadd.f32 1.0, %v1764_v45 }
0x13b0   :  { %1765 = vrcp.f32 %v1386_v46  ;;  %v1399_v50 = vand.u32 2147483648, %v1386_v46  ;;  %v1397_v52 = vand.u32 2147483647, %v1386_v46  ;;  %vm1393_vm8 = vweird.f32 %v1386_v46 }
0x13b2   :  { %v1400_v54 = vor.u32 1.1754944e-38, %v1399_v50  ;;  %vm1398_vm10 = vcmp.eq.f32.partialorder %v1397_v52, 8.507059e+37 }
0x13b6   :  { %v1766_v47 = vpop.eup %1765 }
0x13b7   :  { %v1389_v48 = vmul.f32 %v1766_v47, %v1386_v46  ;;  %vm1394_vm7 = vweird.f32 %v1766_v47 }
0x13b8   :  { %vm1395_vm9 = vmor %vm1393_vm8, %vm1394_vm7 }
0x13b9   :  { %v1390_v49 = vsub.f32 1.0, %v1389_v48 }
0x13bb   :  { %v1391_v51 = vmul.f32 %v1766_v47, %v1390_v49 }
0x13bd   :  { %v1392_v53 = vadd.f32 %v1766_v47, %v1391_v51 }
0x13bf   :  { %v1396_v32 = vsel %vm1395_vm9, %v1766_v47, %v1392_v53  ;;  %v1712_v47 = vld [vmem:[#allocation5] ss:$0 sm:$0xff] }
0x13c0   :  { %v1401_v24 = vsel %vm1398_vm10, %v1400_v54, %v1396_v32 }
0x13c1   :  { %v1418_v55 = vmul.f32 0.5, %v1401_v24 }
0x13c3   :  { %1422 = vperm.xlu0 %1675, %v1418_v55  }
0x13de   :  { %v1373_v56 = vpop.xlane.xlu2 %1372 }
0x13df   :  { %v1379_v43 = vadd.f32 %v1704_v17, %v1373_v56  ;;  %v1710_v17 = vld [vmem:[#allocation4] ss:$0 sm:$0xff] }
0x13e1   :  { %v1665_v38 = vmul.f32 -1.442695, %v1379_v43 }
0x13e2   :  { %v1502_v28 = vpop.f32.mrf.mxu0 }
0x13e3   :  { %1767 = vpow2.f32 %v1665_v38  ;;  %v1503_v29 = vadd.f32 %v1705_v22, %v1502_v28 }
0x13e5   :  { %v1505_v30 = vmax.f32 %v1503_v29, 0.0 }
0x13e7   :  { %v1510_v37 = vmul.f32 %v1706_v23, %v1505_v30 }
0x13e9   :  { %v1768_v57 = vpop.eup %1767  ;;  %v1511_v25 = vsel %vm171_vm1, %v1510_v37, 0.0 }
0x13ea   :  { %v1387_v58 = vadd.f32 1.0, %v1768_v57  ;;  %1512 = vadd.xlane.f32.xlu2 %v1511_v25 }
0x13ec   :  { %1769 = vrcp.f32 %v1387_v58  ;;  %v1414_v62 = vand.u32 2147483648, %v1387_v58  ;;  %v1412_v0 = vand.u32 2147483647, %v1387_v58  ;;  %vm1408_vm12 = vweird.f32 %v1387_v58 }
0x13ee   :  { %v1415_v2 = vor.u32 1.1754944e-38, %v1414_v62  ;;  %vm1413_vm14 = vcmp.eq.f32.partialorder %v1412_v0, 8.507059e+37 }
0x13f2   :  { %v1770_v59 = vpop.eup %1769 }
0x13f3   :  { %v1404_v60 = vmul.f32 %v1770_v59, %v1387_v58  ;;  %vm1409_vm11 = vweird.f32 %v1770_v59 }
0x13f4   :  { %vm1410_vm13 = vmor %vm1408_vm12, %vm1409_vm11 }
0x13f5   :  { %v1405_v61 = vsub.f32 1.0, %v1404_v60 }
0x13f7   :  { %v1406_v63 = vmul.f32 %v1770_v59, %v1405_v61 }
0x13f9   :  { %v1407_v1 = vadd.f32 %v1770_v59, %v1406_v63 }
0x13fb   :  { %v1411_v3 = vsel %vm1410_vm13, %v1770_v59, %v1407_v1 }
0x13fc   :  { %v1416_v4 = vsel %vm1413_vm14, %v1415_v2, %v1411_v3 }
0x13fd   :  { %v1419_v5 = vmul.f32 0.5, %v1416_v4 }
0x13ff   :  { %1427 = vperm.xlu1 %1676, %v1419_v5  }
0x1435   :  { %v1423_v14 = vpop.permute.xlu0 %1422 }
0x1436   :  { %v1430_v16 = vmul.f32 %v1423_v14, %v2510_v19  ;;  %v1707_v19 = vld [vmem:[%s2585_s18] ss:$0 sm:$0xff]  ;;  %s1804_s18 = smov [#allocation6]  }
0x1437   :  { %s1545_s19 = sshll.u32 %s1804_s18, 4  ;;  %s1546_s19 = int_to_ptr.vmem [resolvable:$true] %s1545_s19 }
0x145d   :  { %v1513_v39 = vpop.xlane.xlu2 %1512 }
0x145e   :  { %v1518_v44 = vadd.f32 %v1710_v17, %v1513_v39 }
0x1471   :  { %v1428_v15 = vpop.permute.xlu1 %1427 }
0x1472   :  { %v1431_v18 = vmul.f32 %v1428_v15, %v2515_v36  ;;  %v1709_v36 = vld [vmem:[%s2590_s25] ss:$0 sm:$0xff]  ;;  %s2645_s25 = sld [smem:[#allocation22_spill]] }
0x1474   :  { %v1432_v21 = vadd.f32 %v1431_v18, %v1430_v16 }
0x1476   :  { %1666 = vmatmul.msk.f32.vlgmr.msrb.gmra.mxu3 %vm171_vm1, %v1432_v21 }
0x1478   :  { %s1547_s14 = sshll.u32 %s2645_s25, 4  ;;  %s1548_s14 = int_to_ptr.hbm [resolvable:$true] %s1547_s14 }
0x14f9   :  { %v1461_v26 = vpop.f32.mrf.mxu3 }
0x14fa   :  { %v1462_v27 = vadd.f32 %v1707_v19, %v1461_v26 }
0x14fc   :  { %v1464_v33 = vmax.f32 %v1462_v27, 0.0 }
0x14fe   :  { %v1469_v34 = vmul.f32 %v1708_v31, %v1464_v33 }
0x1500   :  { %v1470_v35 = vsel %vm171_vm1, %v1469_v34, 0.0 }
0x1501   :  { %1471 = vadd.xlane.f32.xlu2 %v1470_v35 }
0x1519   :  { %1524 = vrot.lane.b32.xlu2 %v1709_v36, %s1803_s20 }
0x1574   :  { %v1472_v41 = vpop.xlane.xlu2 %1471 }
0x1575   :  { %v1477_v42 = vadd.f32 %v1711_v40, %v1472_v41 }
0x1577   :  { %v1523_v45 = vmul.f32 %v1709_v36, %v1477_v42 }
0x157c   :  { %v1525_v20 = vpop.permute.xlu2 %1524 }
0x157d   :  { %v1527_v46 = vmul.f32 %v1525_v20, %v1518_v44 }
0x157f   :  { %v1528_v48 = vadd.f32 %v1527_v46, %v1523_v45 }
0x1581   :  { %v1533_v49 = vadd.f32 %v1712_v47, %v1528_v48 }
0x1583   :  { %1536 = vperm.xlu1 %1676, %v1533_v49  }
0x15f5   :  { %v1537_v50 = vpop.permute.xlu1 %1536 }
0x15f6   :  { %1539 = vst [vmem:[#allocation6] sm:$0xff] %v1537_v50 }
0x15f7   :  { %1550 = dma.vmem_to_hbm [thread:$0]  %s1546_s19, 128, %s1548_s14, [#allocation7]  }
0x15f8   :  { %1796 = dma.done.wait [#allocation7], 128  }
0x15f9   :  { %1797 = vsyncadd [#allocation7], 4294967168 }
0x15fa   :  { %1555 = vsyncpa [#allocation7], 1 }

</bundles_post_ra>
